<compile_context>
chip_gen: v7x
topology: tpu7x:2x2x1
jax: 0.10.0
libtpu: 0.0.40
codegen_flags: <defaults>
</compile_context>

<pallas_src>
import jax
import jax.numpy as jnp
from jax.experimental import pallas as pl
from jax.experimental.pallas import tpu as pltpu

# Small Mixtral-like config
HIDDEN = 128          # config.hidden_size
FFN = 256             # config.intermediate_size
NUM_EXPERTS = 4       # config.num_local_experts
TOP_K = 2             # config.num_experts_per_tok
NUM_TOKENS = 8
GROUP_SIZE = 128      # W4 quant group size
EF = NUM_EXPERTS * FFN


def _dyn_quant_per_token(x):
    """Dynamic symmetric per-token int8 activation quantization.

    Returns (integer-valued q in [-127, 127] as f32, dequant scale of shape (rows, 1)).
    Shared by the kernel and the pure-JAX reference so quantization decisions match.
    """
    absmax = jnp.maximum(jnp.max(jnp.abs(x), axis=-1, keepdims=True), 1e-6)
    q = jnp.clip(jnp.round(x * (127.0 / absmax)), -127.0, 127.0)
    return q, absmax / 127.0


def _quantize_w4_groupwise(w, group_size):
    """Symmetric int4 group-wise weight quantization along the input (K) dim.

    Returns (int4-valued f32 array in [-8, 7], fp32 scales of shape (E, ng, OUT)).
    """
    E, IN, OUT = w.shape
    ng = IN // group_size
    wg = w.reshape(E, ng, group_size, OUT)
    scale = jnp.maximum(jnp.max(jnp.abs(wg), axis=2, keepdims=True) / 7.0, 1e-8)
    q = jnp.clip(jnp.round(wg / scale), -8.0, 7.0)
    return q.reshape(E, IN, OUT), jnp.squeeze(scale, axis=2)


def prepare_moe_weights(gate_w, w13, w2, group_size=GROUP_SIZE):
    """Setup-time W4 quantization + dequant-to-bf16 fold + kernel-friendly layout.

    Off the hot path. Folding the per-group scale into bf16 weights introduces <=2^-8
    relative rounding (negligible vs the int4 quantization error) and removes ALL per-call
    weight dtype conversions from the kernel.
    """
    assert HIDDEN % group_size == 0 and FFN % group_size == 0
    gate_wt = jnp.asarray(gate_w, jnp.float32).T                       # (H, E)

    # w1_w3: (E, H, 2F) -> quantize along H, fold scale, layout [all gates | all ups].
    w13_q, w13_s = _quantize_w4_groupwise(w13, group_size)             # (E,H,2F), (E,ng,2F)
    ng13 = HIDDEN // group_size
    w13_deq = (w13_q.reshape(NUM_EXPERTS, ng13, group_size, 2 * FFN)
               * w13_s[:, :, None, :]).reshape(NUM_EXPERTS, HIDDEN, 2 * FFN)
    gates = jnp.transpose(w13_deq[:, :, :FFN], (1, 0, 2)).reshape(HIDDEN, EF)
    ups = jnp.transpose(w13_deq[:, :, FFN:], (1, 0, 2)).reshape(HIDDEN, EF)
    w13_cat = jnp.concatenate([gates, ups], axis=1).astype(jnp.bfloat16)   # (H, 2*E*F)

    # w2: (E, FFN, H) -> quantize along FFN, fold per-group scale -> one matmul per expert.
    w2_q, w2_s = _quantize_w4_groupwise(w2, group_size)                # (E,FFN,H), (E,ng,H)
    ng2 = FFN // group_size
    w2_deq = (w2_q.reshape(NUM_EXPERTS, ng2, group_size, HIDDEN)
              * w2_s[:, :, None, :]).reshape(NUM_EXPERTS * FFN, HIDDEN)
    w2_cat = w2_deq.astype(jnp.bfloat16)                               # (E*FFN, H)
    return gate_wt, w13_cat, w2_cat


def _moe_kernel(x_ref, gate_wt_ref, w13_ref, w2_hbm_ref,
                o_ref, rw_out_ref,
                w2_vmem, w2_sem):
    """Single-invocation MoE body.

    router -> quantize -> wide w1_w3 matmul -> SiLU*mul -> per-expert requant -> w2 -> combine.
    The w2 weight slab is fetched asynchronously and its wait sits right before the expert
    loop so the DMA hides behind the router + w13 stage.
    """
    # Kick off the w2 weight fetch immediately (overlaps with everything below).
    w2_copy = pltpu.make_async_copy(w2_hbm_ref, w2_vmem, w2_sem)
    w2_copy.start()

    x = x_ref[...]                                                     # (T, H) f32

    # ---- Fused router: gate matmul -> softmax -> top-2-of-4 -> renormalize -------------
    logits = jnp.dot(x, gate_wt_ref[...], preferred_element_type=jnp.float32)   # (T, E)
    logits = logits - jnp.max(logits, axis=-1, keepdims=True)
    ex = jnp.exp(logits)
    probs = ex / jnp.sum(ex, axis=-1, keepdims=True)                   # (T, E)

    eidx = jax.lax.broadcasted_iota(jnp.int32, (NUM_TOKENS, NUM_EXPERTS), 1)
    m1 = jnp.max(probs, axis=-1, keepdims=True)
    idx1 = jnp.min(jnp.where(probs == m1, eidx, NUM_EXPERTS), axis=-1, keepdims=True)
    probs2 = jnp.where(eidx == idx1, -1.0, probs)                      # softmax probs > 0
    m2 = jnp.max(probs2, axis=-1, keepdims=True)
    idx2 = jnp.min(jnp.where(probs2 == m2, eidx, NUM_EXPERTS), axis=-1, keepdims=True)
    denom = m1 + m2
    w1n = m1 / denom                                                   # (T, 1) top-1 weight
    w2n = m2 / denom                                                   # (T, 1) top-2 weight
    rw_out_ref[...] = jnp.concatenate([w1n, w2n], axis=-1)             # (T, TOP_K)

    # ---- Per-token dynamic int8 activation quantization (expert-invariant, once) -------
    xq, s_in = _dyn_quant_per_token(x)                                 # integer f32, (T,1)
    xq_bf = xq.astype(jnp.bfloat16)                                    # |q| <= 127 -> exact

    # ---- Fused gate/up projections of ALL experts: one wide bf16 MXU matmul ------------
    gu = jnp.dot(xq_bf, w13_ref[...], preferred_element_type=jnp.float32)   # (T, 2*E*F)
    gate_up = gu * s_in                                                # dequant (W scale folded)
    g_all = gate_up[:, :EF]
    u_all = gate_up[:, EF:]
    h_all = (g_all * jax.nn.sigmoid(g_all)) * u_all                    # one SiLU*mul, (T, E*F)

    # w2 weights must be resident from here on.
    w2_copy.wait()

    acc = None
    for e in range(NUM_EXPERTS):                                       # statically unrolled
        h = h_all[:, e * FFN:(e + 1) * FFN]                            # (T, FFN)

        # SiluAndMulQuant: re-quantize the intermediate activations per (token, expert).
        hq, s_h = _dyn_quant_per_token(h)
        hq_bf = hq.astype(jnp.bfloat16)

        # w2 projection: single matmul per expert (group scale folded at prep time).
        out_e = jnp.dot(hq_bf, w2_vmem[e * FFN:(e + 1) * FFN, :],
                        preferred_element_type=jnp.float32)            # (T, H)

        # moe_finalize_routing: routing-weighted combine (dense dispatch; 0 if unselected).
        rw_e = jnp.where(idx1 == e, w1n, jnp.where(idx2 == e, w2n, 0.0))   # (T, 1)
        contrib = (rw_e * s_h) * out_e
        acc = contrib if acc is None else acc + contrib

    o_ref[...] = acc


def mixtral_sparse_moe_block(hidden_states, gate_wt, w13_cat, w2_cat):
    """Returns (output_hidden_states (T, H) f32, routing_weights (T, top_k) f32)."""
    T, H = hidden_states.shape
    out, routing_weights = pl.pallas_call(
        _moe_kernel,
        out_shape=(jax.ShapeDtypeStruct((T, H), jnp.float32),
                   jax.ShapeDtypeStruct((T, TOP_K), jnp.float32)),
        in_specs=[
            pl.BlockSpec(memory_space=pltpu.MemorySpace.VMEM),   # x
            pl.BlockSpec(memory_space=pltpu.MemorySpace.VMEM),   # gate_w^T
            pl.BlockSpec(memory_space=pltpu.MemorySpace.VMEM),   # w1_w3 (bf16)
            pl.BlockSpec(memory_space=pl.ANY),                   # w2 (bf16, HBM, manual DMA)
        ],
        out_specs=(pl.BlockSpec(memory_space=pltpu.MemorySpace.VMEM),
                   pl.BlockSpec(memory_space=pltpu.MemorySpace.VMEM)),
        scratch_shapes=[
            pltpu.VMEM((NUM_EXPERTS * FFN, HIDDEN), jnp.bfloat16),   # w2 landing buffer
            pltpu.SemaphoreType.DMA,                                 # w2 DMA completion
        ],
    )(hidden_states.astype(jnp.float32), gate_wt, w13_cat, w2_cat)
    return out, routing_weights


# Keep everything in one jit (launch-overhead dominated at T=8).
moe_forward = jax.jit(mixtral_sparse_moe_block)


def _reference_moe(x, gate_wt, w13_cat, w2_cat):
    """Pure-JAX reference with identical routing / quantization semantics (f32 matmuls)."""
    logits = (x @ gate_wt).astype(jnp.float32)
    probs = jax.nn.softmax(logits, axis=-1)
    topk_w, topk_idx = jax.lax.top_k(probs, TOP_K)
    topk_w = topk_w / jnp.sum(topk_w, axis=-1, keepdims=True)
    dense_rw = jnp.sum(
        jax.nn.one_hot(topk_idx, NUM_EXPERTS, dtype=jnp.float32) * topk_w[..., None], axis=1)

    xq, s_in = _dyn_quant_per_token(x)
    gu = (xq @ w13_cat.astype(jnp.float32)) * s_in
    g_all, u_all = gu[:, :EF], gu[:, EF:]
    h_all = (g_all * jax.nn.sigmoid(g_all)) * u_all

    acc = jnp.zeros((x.shape[0], HIDDEN), jnp.float32)
    for e in range(NUM_EXPERTS):
        h = h_all[:, e * FFN:(e + 1) * FFN]
        hq, s_h = _dyn_quant_per_token(h)
        out_e = hq @ w2_cat[e * FFN:(e + 1) * FFN].astype(jnp.float32)
        acc = acc + (dense_rw[:, e:e + 1] * s_h) * out_e
    return acc, topk_w


if __name__ == "__main__":
    key = jax.random.PRNGKey(0)
    k1, k2, k3, k4 = jax.random.split(key, 4)

    hidden_states = jax.random.normal(k1, (NUM_TOKENS, HIDDEN), jnp.float32)
    gate_w = jax.random.normal(k2, (NUM_EXPERTS, HIDDEN), jnp.float32) * 0.05
    w13 = jax.random.normal(k3, (NUM_EXPERTS, HIDDEN, 2 * FFN), jnp.float32) * 0.05
    w2 = jax.random.normal(k4, (NUM_EXPERTS, FFN, HIDDEN), jnp.float32) * 0.05

    # W4 (group_size=128) weight quantization + bf16 fold + kernel layout, done once.
    gate_wt, w13_cat, w2_cat = prepare_moe_weights(gate_w, w13, w2)

    out, routing_weights = moe_forward(hidden_states, gate_wt, w13_cat, w2_cat)
    out = jax.block_until_ready(out)

    # Correctness check against the pure-JAX reference on the identical prepared weights.
    ref_out, ref_rw = _reference_moe(hidden_states, gate_wt, w13_cat, w2_cat)

    assert out.shape == (NUM_TOKENS, HIDDEN)
    assert routing_weights.shape == (NUM_TOKENS, TOP_K)
    max_err = float(jnp.max(jnp.abs(out - ref_out)))
    rw_err = float(jnp.max(jnp.abs(routing_weights - ref_rw)))
    assert jnp.allclose(out, ref_out, atol=2e-3, rtol=2e-3), max_err
    assert jnp.allclose(routing_weights, ref_rw, atol=1e-5, rtol=1e-5), rw_err

    print("KERNEL_OK")
</pallas_src>

<mosaic_0001>
module attributes {stable_mosaic.version = 11 : i64} {
  func.func @_moe_kernel(%arg0: memref<8x128xf32, #tpu.memory_space<vmem>>, %arg1: memref<128x4xf32, #tpu.memory_space<vmem>>, %arg2: memref<128x2048xbf16, #tpu.memory_space<vmem>>, %arg3: memref<1024x128xbf16, #tpu.memory_space<any>>, %arg4: memref<8x128xf32, #tpu.memory_space<vmem>>, %arg5: memref<8x2xf32, #tpu.memory_space<vmem>>, %arg6: memref<1024x128xbf16, #tpu.memory_space<vmem>>, %arg7: memref<!tpu.dma_semaphore, #tpu.memory_space<semaphore_mem>>) attributes {dimension_semantics = [], scalar_prefetch = 0 : i64, scratch_operands = 2 : i64, tpu.core_type = #tpu.core_type<tc>} {
    tpu.enqueue_dma source(%arg3 : memref<1024x128xbf16, #tpu.memory_space<any>>) target(%arg6 : memref<1024x128xbf16, #tpu.memory_space<vmem>>) target_semaphore(%arg7 : memref<!tpu.dma_semaphore, #tpu.memory_space<semaphore_mem>>)
    %c0 = arith.constant 0 : index
    %c0_0 = arith.constant 0 : index
    %0 = vector.load %arg0[%c0, %c0_0] : memref<8x128xf32, #tpu.memory_space<vmem>>, vector<8x128xf32>
    %c0_1 = arith.constant 0 : index
    %c0_2 = arith.constant 0 : index
    %1 = vector.load %arg1[%c0_1, %c0_2] : memref<128x4xf32, #tpu.memory_space<vmem>>, vector<128x4xf32>
    %cst = arith.constant dense<0.000000e+00> : vector<8x4xf32>
    %2 = tpu.matmul %0, %1, %cst {dimension_numbers = #tpu.dot_dimension_numbers<[1], [0], [0], [1], [0, 0, 1, 1], [], []>} : vector<8x128xf32>, vector<128x4xf32>, vector<8x4xf32> -> vector<8x4xf32>
    %cst_3 = arith.constant dense<0xFF800000> : vector<8xf32>
    %3 = vector.multi_reduction <maximumf>, %2, %cst_3 [1] : vector<8x4xf32> to vector<8xf32>
    %4 = vector.shape_cast %3 : vector<8xf32> to vector<8x1xf32>
    %5 = vector.broadcast %4 : vector<8x1xf32> to vector<8x4xf32>
    %6 = arith.subf %2, %5 : vector<8x4xf32>
    %7 = math.exp %6 : vector<8x4xf32>
    %cst_4 = arith.constant dense<0.000000e+00> : vector<8xf32>
    %8 = vector.multi_reduction <add>, %7, %cst_4 [1] : vector<8x4xf32> to vector<8xf32>
    %9 = vector.shape_cast %8 : vector<8xf32> to vector<8x1xf32>
    %10 = vector.broadcast %9 : vector<8x1xf32> to vector<8x4xf32>
    %11 = arith.divf %7, %10 : vector<8x4xf32>
    %12 = tpu.iota {dimensions = array<i32: 1>} : vector<8x4xi32>
    %cst_5 = arith.constant dense<0xFF800000> : vector<8xf32>
    %13 = vector.multi_reduction <maximumf>, %11, %cst_5 [1] : vector<8x4xf32> to vector<8xf32>
    %14 = vector.shape_cast %13 : vector<8xf32> to vector<8x1xf32>
    %15 = vector.broadcast %14 : vector<8x1xf32> to vector<8x4xf32>
    %16 = arith.cmpf oeq, %11, %15 : vector<8x4xf32>
    %c4_i32 = arith.constant 4 : i32
    %17 = vector.broadcast %c4_i32 : i32 to vector<8x4xi32>
    %18 = arith.select %16, %12, %17 : vector<8x4xi1>, vector<8x4xi32>
    %cst_6 = arith.constant dense<2147483647> : vector<8xi32>
    %19 = vector.multi_reduction <minsi>, %18, %cst_6 [1] : vector<8x4xi32> to vector<8xi32>
    %20 = vector.shape_cast %19 : vector<8xi32> to vector<8x1xi32>
    %21 = vector.broadcast %20 : vector<8x1xi32> to vector<8x4xi32>
    %22 = arith.cmpi eq, %12, %21 : vector<8x4xi32>
    %cst_7 = arith.constant -1.000000e+00 : f32
    %23 = vector.broadcast %cst_7 : f32 to vector<8x4xf32>
    %24 = arith.select %22, %23, %11 : vector<8x4xi1>, vector<8x4xf32>
    %cst_8 = arith.constant dense<0xFF800000> : vector<8xf32>
    %25 = vector.multi_reduction <maximumf>, %24, %cst_8 [1] : vector<8x4xf32> to vector<8xf32>
    %26 = vector.shape_cast %25 : vector<8xf32> to vector<8x1xf32>
    %27 = vector.broadcast %26 : vector<8x1xf32> to vector<8x4xf32>
    %28 = arith.cmpf oeq, %24, %27 : vector<8x4xf32>
    %c4_i32_9 = arith.constant 4 : i32
    %29 = vector.broadcast %c4_i32_9 : i32 to vector<8x4xi32>
    %30 = arith.select %28, %12, %29 : vector<8x4xi1>, vector<8x4xi32>
    %cst_10 = arith.constant dense<2147483647> : vector<8xi32>
    %31 = vector.multi_reduction <minsi>, %30, %cst_10 [1] : vector<8x4xi32> to vector<8xi32>
    %32 = vector.shape_cast %31 : vector<8xi32> to vector<8x1xi32>
    %33 = arith.addf %14, %26 : vector<8x1xf32>
    %34 = arith.divf %14, %33 : vector<8x1xf32>
    %35 = arith.divf %26, %33 : vector<8x1xf32>
    %36 = tpu.concatenate %34, %35 in 1 : vector<8x1xf32>, vector<8x1xf32> -> vector<8x2xf32>
    %c0_11 = arith.constant 0 : index
    %c0_12 = arith.constant 0 : index
    %37 = vector.load %arg5[%c0_11, %c0_12] : memref<8x2xf32, #tpu.memory_space<vmem>>, vector<8x2xf32>
    tpu.vector_store %arg5[%c0_11, %c0_12], %36 {strides = array<i32>} : memref<8x2xf32, #tpu.memory_space<vmem>>, vector<8x2xf32>,
    %38 = math.absf %0 : vector<8x128xf32>
    %cst_13 = arith.constant dense<0xFF800000> : vector<8xf32>
    %39 = vector.multi_reduction <maximumf>, %38, %cst_13 [1] : vector<8x128xf32> to vector<8xf32>
    %40 = vector.shape_cast %39 : vector<8xf32> to vector<8x1xf32>
    %cst_14 = arith.constant 9.99999997E-7 : f32
    %41 = vector.broadcast %cst_14 : f32 to vector<8x1xf32>
    %42 = arith.maximumf %40, %41 : vector<8x1xf32>
    %cst_15 = arith.constant 1.270000e+02 : f32
    %43 = vector.broadcast %cst_15 : f32 to vector<8x1xf32>
    %44 = arith.divf %43, %42 : vector<8x1xf32>
    %45 = vector.broadcast %44 : vector<8x1xf32> to vector<8x128xf32>
    %46 = arith.mulf %0, %45 : vector<8x128xf32>
    %47 = math.roundeven %46 : vector<8x128xf32>
    %cst_16 = arith.constant -1.270000e+02 : f32
    %cst_17 = arith.constant 1.270000e+02 : f32
    %48 = vector.broadcast %cst_16 : f32 to vector<8x128xf32>
    %49 = arith.maximumf %48, %47 : vector<8x128xf32>
    %50 = vector.broadcast %cst_17 : f32 to vector<8x128xf32>
    %51 = arith.minimumf %50, %49 : vector<8x128xf32>
    %cst_18 = arith.constant 1.270000e+02 : f32
    %52 = vector.broadcast %cst_18 : f32 to vector<8x1xf32>
    %53 = arith.divf %42, %52 : vector<8x1xf32>
    %54 = arith.truncf %51 : vector<8x128xf32> to vector<8x128xbf16>
    %c0_19 = arith.constant 0 : index
    %c0_20 = arith.constant 0 : index
    %55 = vector.load %arg2[%c0_19, %c0_20] : memref<128x2048xbf16, #tpu.memory_space<vmem>>, vector<128x2048xbf16>
    %cst_21 = arith.constant dense<0.000000e+00> : vector<8x2048xf32>
    %56 = tpu.matmul %54, %55, %cst_21 {dimension_numbers = #tpu.dot_dimension_numbers<[1], [0], [0], [1], [0, 0, 1, 1], [], []>} : vector<8x128xbf16>, vector<128x2048xbf16>, vector<8x2048xf32> -> vector<8x2048xf32>
    %57 = vector.broadcast %53 : vector<8x1xf32> to vector<8x2048xf32>
    %58 = arith.mulf %56, %57 : vector<8x2048xf32>
    %59 = vector.extract_strided_slice %58 {offsets = [0, 0], sizes = [8, 1024], strides = [1, 1]} : vector<8x2048xf32> to vector<8x1024xf32>
    %60 = vector.extract_strided_slice %58 {offsets = [0, 1024], sizes = [8, 1024], strides = [1, 1]} : vector<8x2048xf32> to vector<8x1024xf32>
    %61 = arith.negf %59 : vector<8x1024xf32>
    %62 = math.exp %61 : vector<8x1024xf32>
    %cst_22 = arith.constant 1.000000e+00 : f32
    %63 = vector.broadcast %cst_22 : f32 to vector<8x1024xf32>
    %64 = arith.addf %63, %62 : vector<8x1024xf32>
    %65 = arith.divf %63, %64 : vector<8x1024xf32>
    %66 = arith.mulf %59, %65 : vector<8x1024xf32>
    %67 = arith.mulf %66, %60 : vector<8x1024xf32>
    tpu.wait_dma2 semaphore(%arg7 : memref<!tpu.dma_semaphore, #tpu.memory_space<semaphore_mem>>) src(%arg3 : memref<1024x128xbf16, #tpu.memory_space<any>>) dst(%arg6 : memref<1024x128xbf16, #tpu.memory_space<vmem>>)
    %68 = vector.extract_strided_slice %67 {offsets = [0, 0], sizes = [8, 256], strides = [1, 1]} : vector<8x1024xf32> to vector<8x256xf32>
    %69 = math.absf %68 : vector<8x256xf32>
    %cst_23 = arith.constant dense<0xFF800000> : vector<8xf32>
    %70 = vector.multi_reduction <maximumf>, %69, %cst_23 [1] : vector<8x256xf32> to vector<8xf32>
    %71 = vector.shape_cast %70 : vector<8xf32> to vector<8x1xf32>
    %cst_24 = arith.constant 9.99999997E-7 : f32
    %72 = vector.broadcast %cst_24 : f32 to vector<8x1xf32>
    %73 = arith.maximumf %71, %72 : vector<8x1xf32>
    %cst_25 = arith.constant 1.270000e+02 : f32
    %74 = vector.broadcast %cst_25 : f32 to vector<8x1xf32>
    %75 = arith.divf %74, %73 : vector<8x1xf32>
    %76 = vector.broadcast %75 : vector<8x1xf32> to vector<8x256xf32>
    %77 = arith.mulf %68, %76 : vector<8x256xf32>
    %78 = math.roundeven %77 : vector<8x256xf32>
    %cst_26 = arith.constant -1.270000e+02 : f32
    %cst_27 = arith.constant 1.270000e+02 : f32
    %79 = vector.broadcast %cst_26 : f32 to vector<8x256xf32>
    %80 = arith.maximumf %79, %78 : vector<8x256xf32>
    %81 = vector.broadcast %cst_27 : f32 to vector<8x256xf32>
    %82 = arith.minimumf %81, %80 : vector<8x256xf32>
    %cst_28 = arith.constant 1.270000e+02 : f32
    %83 = vector.broadcast %cst_28 : f32 to vector<8x1xf32>
    %84 = arith.divf %73, %83 : vector<8x1xf32>
    %85 = arith.truncf %82 : vector<8x256xf32> to vector<8x256xbf16>
    %c0_29 = arith.constant 0 : index
    %c0_30 = arith.constant 0 : index
    %86 = vector.load %arg6[%c0_29, %c0_30] : memref<1024x128xbf16, #tpu.memory_space<vmem>>, vector<256x128xbf16>
    %cst_31 = arith.constant dense<0.000000e+00> : vector<8x128xf32>
    %87 = tpu.matmul %85, %86, %cst_31 {dimension_numbers = #tpu.dot_dimension_numbers<[1], [0], [0], [1], [0, 0, 1, 1], [], []>} : vector<8x256xbf16>, vector<256x128xbf16>, vector<8x128xf32> -> vector<8x128xf32>
    %c0_i32 = arith.constant 0 : i32
    %88 = vector.broadcast %c0_i32 : i32 to vector<8x1xi32>
    %89 = arith.cmpi eq, %20, %88 : vector<8x1xi32>
    %c0_i32_32 = arith.constant 0 : i32
    %90 = vector.broadcast %c0_i32_32 : i32 to vector<8x1xi32>
    %91 = arith.cmpi eq, %32, %90 : vector<8x1xi32>
    %cst_33 = arith.constant 0.000000e+00 : f32
    %92 = vector.broadcast %cst_33 : f32 to vector<8x1xf32>
    %93 = arith.select %91, %35, %92 : vector<8x1xi1>, vector<8x1xf32>
    %94 = arith.select %89, %34, %93 : vector<8x1xi1>, vector<8x1xf32>
    %95 = arith.mulf %94, %84 : vector<8x1xf32>
    %96 = vector.broadcast %95 : vector<8x1xf32> to vector<8x128xf32>
    %97 = arith.mulf %96, %87 : vector<8x128xf32>
    %98 = vector.extract_strided_slice %67 {offsets = [0, 256], sizes = [8, 256], strides = [1, 1]} : vector<8x1024xf32> to vector<8x256xf32>
    %99 = math.absf %98 : vector<8x256xf32>
    %cst_34 = arith.constant dense<0xFF800000> : vector<8xf32>
    %100 = vector.multi_reduction <maximumf>, %99, %cst_34 [1] : vector<8x256xf32> to vector<8xf32>
    %101 = vector.shape_cast %100 : vector<8xf32> to vector<8x1xf32>
    %cst_35 = arith.constant 9.99999997E-7 : f32
    %102 = vector.broadcast %cst_35 : f32 to vector<8x1xf32>
    %103 = arith.maximumf %101, %102 : vector<8x1xf32>
    %cst_36 = arith.constant 1.270000e+02 : f32
    %104 = vector.broadcast %cst_36 : f32 to vector<8x1xf32>
    %105 = arith.divf %104, %103 : vector<8x1xf32>
    %106 = vector.broadcast %105 : vector<8x1xf32> to vector<8x256xf32>
    %107 = arith.mulf %98, %106 : vector<8x256xf32>
    %108 = math.roundeven %107 : vector<8x256xf32>
    %cst_37 = arith.constant -1.270000e+02 : f32
    %cst_38 = arith.constant 1.270000e+02 : f32
    %109 = vector.broadcast %cst_37 : f32 to vector<8x256xf32>
    %110 = arith.maximumf %109, %108 : vector<8x256xf32>
    %111 = vector.broadcast %cst_38 : f32 to vector<8x256xf32>
    %112 = arith.minimumf %111, %110 : vector<8x256xf32>
    %cst_39 = arith.constant 1.270000e+02 : f32
    %113 = vector.broadcast %cst_39 : f32 to vector<8x1xf32>
    %114 = arith.divf %103, %113 : vector<8x1xf32>
    %115 = arith.truncf %112 : vector<8x256xf32> to vector<8x256xbf16>
    %c256 = arith.constant 256 : index
    %c0_40 = arith.constant 0 : index
    %116 = vector.load %arg6[%c256, %c0_40] : memref<1024x128xbf16, #tpu.memory_space<vmem>>, vector<256x128xbf16>
    %cst_41 = arith.constant dense<0.000000e+00> : vector<8x128xf32>
    %117 = tpu.matmul %115, %116, %cst_41 {dimension_numbers = #tpu.dot_dimension_numbers<[1], [0], [0], [1], [0, 0, 1, 1], [], []>} : vector<8x256xbf16>, vector<256x128xbf16>, vector<8x128xf32> -> vector<8x128xf32>
    %c1_i32 = arith.constant 1 : i32
    %118 = vector.broadcast %c1_i32 : i32 to vector<8x1xi32>
    %119 = arith.cmpi eq, %20, %118 : vector<8x1xi32>
    %c1_i32_42 = arith.constant 1 : i32
    %120 = vector.broadcast %c1_i32_42 : i32 to vector<8x1xi32>
    %121 = arith.cmpi eq, %32, %120 : vector<8x1xi32>
    %cst_43 = arith.constant 0.000000e+00 : f32
    %122 = vector.broadcast %cst_43 : f32 to vector<8x1xf32>
    %123 = arith.select %121, %35, %122 : vector<8x1xi1>, vector<8x1xf32>
    %124 = arith.select %119, %34, %123 : vector<8x1xi1>, vector<8x1xf32>
    %125 = arith.mulf %124, %114 : vector<8x1xf32>
    %126 = vector.broadcast %125 : vector<8x1xf32> to vector<8x128xf32>
    %127 = arith.mulf %126, %117 : vector<8x128xf32>
    %128 = arith.addf %97, %127 : vector<8x128xf32>
    %129 = vector.extract_strided_slice %67 {offsets = [0, 512], sizes = [8, 256], strides = [1, 1]} : vector<8x1024xf32> to vector<8x256xf32>
    %130 = math.absf %129 : vector<8x256xf32>
    %cst_44 = arith.constant dense<0xFF800000> : vector<8xf32>
    %131 = vector.multi_reduction <maximumf>, %130, %cst_44 [1] : vector<8x256xf32> to vector<8xf32>
    %132 = vector.shape_cast %131 : vector<8xf32> to vector<8x1xf32>
    %cst_45 = arith.constant 9.99999997E-7 : f32
    %133 = vector.broadcast %cst_45 : f32 to vector<8x1xf32>
    %134 = arith.maximumf %132, %133 : vector<8x1xf32>
    %cst_46 = arith.constant 1.270000e+02 : f32
    %135 = vector.broadcast %cst_46 : f32 to vector<8x1xf32>
    %136 = arith.divf %135, %134 : vector<8x1xf32>
    %137 = vector.broadcast %136 : vector<8x1xf32> to vector<8x256xf32>
    %138 = arith.mulf %129, %137 : vector<8x256xf32>
    %139 = math.roundeven %138 : vector<8x256xf32>
    %cst_47 = arith.constant -1.270000e+02 : f32
    %cst_48 = arith.constant 1.270000e+02 : f32
    %140 = vector.broadcast %cst_47 : f32 to vector<8x256xf32>
    %141 = arith.maximumf %140, %139 : vector<8x256xf32>
    %142 = vector.broadcast %cst_48 : f32 to vector<8x256xf32>
    %143 = arith.minimumf %142, %141 : vector<8x256xf32>
    %cst_49 = arith.constant 1.270000e+02 : f32
    %144 = vector.broadcast %cst_49 : f32 to vector<8x1xf32>
    %145 = arith.divf %134, %144 : vector<8x1xf32>
    %146 = arith.truncf %143 : vector<8x256xf32> to vector<8x256xbf16>
    %c512 = arith.constant 512 : index
    %c0_50 = arith.constant 0 : index
    %147 = vector.load %arg6[%c512, %c0_50] : memref<1024x128xbf16, #tpu.memory_space<vmem>>, vector<256x128xbf16>
    %cst_51 = arith.constant dense<0.000000e+00> : vector<8x128xf32>
    %148 = tpu.matmul %146, %147, %cst_51 {dimension_numbers = #tpu.dot_dimension_numbers<[1], [0], [0], [1], [0, 0, 1, 1], [], []>} : vector<8x256xbf16>, vector<256x128xbf16>, vector<8x128xf32> -> vector<8x128xf32>
    %c2_i32 = arith.constant 2 : i32
    %149 = vector.broadcast %c2_i32 : i32 to vector<8x1xi32>
    %150 = arith.cmpi eq, %20, %149 : vector<8x1xi32>
    %c2_i32_52 = arith.constant 2 : i32
    %151 = vector.broadcast %c2_i32_52 : i32 to vector<8x1xi32>
    %152 = arith.cmpi eq, %32, %151 : vector<8x1xi32>
    %cst_53 = arith.constant 0.000000e+00 : f32
    %153 = vector.broadcast %cst_53 : f32 to vector<8x1xf32>
    %154 = arith.select %152, %35, %153 : vector<8x1xi1>, vector<8x1xf32>
    %155 = arith.select %150, %34, %154 : vector<8x1xi1>, vector<8x1xf32>
    %156 = arith.mulf %155, %145 : vector<8x1xf32>
    %157 = vector.broadcast %156 : vector<8x1xf32> to vector<8x128xf32>
    %158 = arith.mulf %157, %148 : vector<8x128xf32>
    %159 = arith.addf %128, %158 : vector<8x128xf32>
    %160 = vector.extract_strided_slice %67 {offsets = [0, 768], sizes = [8, 256], strides = [1, 1]} : vector<8x1024xf32> to vector<8x256xf32>
    %161 = math.absf %160 : vector<8x256xf32>
    %cst_54 = arith.constant dense<0xFF800000> : vector<8xf32>
    %162 = vector.multi_reduction <maximumf>, %161, %cst_54 [1] : vector<8x256xf32> to vector<8xf32>
    %163 = vector.shape_cast %162 : vector<8xf32> to vector<8x1xf32>
    %cst_55 = arith.constant 9.99999997E-7 : f32
    %164 = vector.broadcast %cst_55 : f32 to vector<8x1xf32>
    %165 = arith.maximumf %163, %164 : vector<8x1xf32>
    %cst_56 = arith.constant 1.270000e+02 : f32
    %166 = vector.broadcast %cst_56 : f32 to vector<8x1xf32>
    %167 = arith.divf %166, %165 : vector<8x1xf32>
    %168 = vector.broadcast %167 : vector<8x1xf32> to vector<8x256xf32>
    %169 = arith.mulf %160, %168 : vector<8x256xf32>
    %170 = math.roundeven %169 : vector<8x256xf32>
    %cst_57 = arith.constant -1.270000e+02 : f32
    %cst_58 = arith.constant 1.270000e+02 : f32
    %171 = vector.broadcast %cst_57 : f32 to vector<8x256xf32>
    %172 = arith.maximumf %171, %170 : vector<8x256xf32>
    %173 = vector.broadcast %cst_58 : f32 to vector<8x256xf32>
    %174 = arith.minimumf %173, %172 : vector<8x256xf32>
    %cst_59 = arith.constant 1.270000e+02 : f32
    %175 = vector.broadcast %cst_59 : f32 to vector<8x1xf32>
    %176 = arith.divf %165, %175 : vector<8x1xf32>
    %177 = arith.truncf %174 : vector<8x256xf32> to vector<8x256xbf16>
    %c768 = arith.constant 768 : index
    %c0_60 = arith.constant 0 : index
    %178 = vector.load %arg6[%c768, %c0_60] : memref<1024x128xbf16, #tpu.memory_space<vmem>>, vector<256x128xbf16>
    %cst_61 = arith.constant dense<0.000000e+00> : vector<8x128xf32>
    %179 = tpu.matmul %177, %178, %cst_61 {dimension_numbers = #tpu.dot_dimension_numbers<[1], [0], [0], [1], [0, 0, 1, 1], [], []>} : vector<8x256xbf16>, vector<256x128xbf16>, vector<8x128xf32> -> vector<8x128xf32>
    %c3_i32 = arith.constant 3 : i32
    %180 = vector.broadcast %c3_i32 : i32 to vector<8x1xi32>
    %181 = arith.cmpi eq, %20, %180 : vector<8x1xi32>
    %c3_i32_62 = arith.constant 3 : i32
    %182 = vector.broadcast %c3_i32_62 : i32 to vector<8x1xi32>
    %183 = arith.cmpi eq, %32, %182 : vector<8x1xi32>
    %cst_63 = arith.constant 0.000000e+00 : f32
    %184 = vector.broadcast %cst_63 : f32 to vector<8x1xf32>
    %185 = arith.select %183, %35, %184 : vector<8x1xi1>, vector<8x1xf32>
    %186 = arith.select %181, %34, %185 : vector<8x1xi1>, vector<8x1xf32>
    %187 = arith.mulf %186, %176 : vector<8x1xf32>
    %188 = vector.broadcast %187 : vector<8x1xf32> to vector<8x128xf32>
    %189 = arith.mulf %188, %179 : vector<8x128xf32>
    %190 = arith.addf %159, %189 : vector<8x128xf32>
    %c0_64 = arith.constant 0 : index
    %c0_65 = arith.constant 0 : index
    %191 = vector.load %arg4[%c0_64, %c0_65] : memref<8x128xf32, #tpu.memory_space<vmem>>, vector<8x128xf32>
    tpu.vector_store %arg4[%c0_64, %c0_65], %190 {strides = array<i32>} : memref<8x128xf32, #tpu.memory_space<vmem>>, vector<8x128xf32>,
    return
  }
}

</mosaic_0001>

<bundles_post_ra>
// kernel: mixtral_sparse_moe_block.1
= control target key start
LH: loop header
LB: loop body
LE: loop exit
PB: predicated region body
PF: predicated region fallthrough
CT: control target
= control target key end

     0   :  { %11 = vsyncpa [#allocation5], 0  ;;  %s2514_s0 = inlined_call_operand.vmem [shape: f32[8,128], index: 0, kind: input, shape index: {}]   ;;  %s2515_s1 = inlined_call_operand.vmem [shape: f32[128,4], index: 1, kind: input, shape index: {}]   ;;  %s2516_s2 = inlined_call_operand.hbm [shape: bf16[128,2048], index: 2, kind: input, shape index: {}]   ;;  %s2517_s3 = inlined_call_operand.hbm [shape: bf16[1024,128], index: 3, kind: input, shape index: {}]   ;;  %s2518_s4 = inlined_call_operand.hbm [shape: f32[8,128], index: 4, kind: output, shape index: {0}]   ;;  %s2519_s5 = inlined_call_operand.vmem [shape: f32[8,2], index: 5, kind: output, shape index: {1}]  }
   0x1   :  { %12 = vsyncpa [#allocation6], 0  ;;  %s2189_s18 = smov [#allocation4]   ;;  %s2117_s22 = scalar_lea.hbm %s2516_s2, 16384 }
   0x2   :  { %s22_s19 = sshll.u32 %s2189_s18, 4  ;;  %p2118_p0 = scmp.ne.s32.totalorder %s2516_s2, %s2117_s22  ;;  %s23_s19 = int_to_ptr.vmem [resolvable:$true] %s22_s19 }
   0x3   :  { %p2121_p1 = scmp.lt.u32.totalorder %s2117_s22, %s2516_s2 }
   0x5   :  { %p2123_p2 = pnand %p2121_p1, %p2118_p0 }
   0x7   :  { %2126 = shalt.err (!%p2123_p2)
}
   0x8   :  { %s2127_s27 = scalar_lea.vmem %s23_s19, 16384  ;;  %p2132_p4 = scmp.lt.s32.totalorder %s23_s19, %s23_s19 }
   0x9   :  { %p2128_p3 = scmp.ne.s32.totalorder %s23_s19, %s2127_s27  ;;  %p2133_p5 = scmp.lt.s32.totalorder %s2127_s27, %s2127_s27 }
   0xb   :  { %p2134_p6 = por %p2133_p5, %p2132_p4 }
   0xd   :  { %p2135_p7 = pnand %p2134_p6, %p2128_p3 }
   0xf   :  { %2138 = shalt.err (!%p2135_p7)
}
  0x10   :  { %s2190_s28 = smov 1024   ;;  %s2191_s29 = smov 64  }
  0x11   :  { %28 = dma.hbm_to_vmem [thread:$0]  %s2516_s2, 16384, %s23_s19, [#allocation5], %s2190_s28, %s2190_s28, %s2191_s29  }
  0x12   :  { %2183 = dma.done.wait [#allocation5], 16384  }
  0x13   :  { %2184 = vsyncadd [#allocation5], 4294950912  ;;  %v2192_v0 = vmov 0.0|0.0   ;;  %vm2193_vm0 = vmmov 0   ;;  %v2194_v1 = vmov 0.0   ;;  %v45_v2 = vld [vmem:[%s2515_s1] sm:$0xff] }
  0x14   :  { %2027 = vmatprep.subr.bf16.mxu0 %v2192_v0  ;;  %2024 = vmatprep.mubr.msk.f32.mxu0 %vm2193_vm0, %v2194_v1  ;;  %v46_v3 = vld [vmem:[%s2515_s1 + $0x8] sm:$0xff]  ;;  %v47_v4 = vld [vmem:[%s2515_s1 + $0x10] sm:$0xff]  ;;  %v48_v6 = vld [vmem:[%s2515_s1 + $0x18] sm:$0xff]  ;;  %vm131_vm1 = vcmask 31744   ;;  %vm191_vm6 = vcmask 7168   ;;  %vm193_vm7 = vcmask 15360  }
  0x15   :  { %v2028_v5 = vpack.c.bf16 %v46_v3, %v45_v2  ;;  %v2031_v7 = vpack.c.bf16 %v48_v6, %v47_v4  ;;  %v49_v8 = vld [vmem:[%s2515_s1 + $0x20] sm:$0xff]  ;;  %v50_v9 = vld [vmem:[%s2515_s1 + $0x28] sm:$0xff]  ;;  %v51_v11 = vld [vmem:[%s2515_s1 + $0x30] sm:$0xff]  ;;  %s2196_s14 = smov [#allocation2]   ;;  %s2139_s18 = scalar_lea.hbm %s2517_s3, 8192 }
  0x16   :  { %v2034_v10 = vpack.c.bf16 %v50_v9, %v49_v8  ;;  %v52_v12 = vld [vmem:[%s2515_s1 + $0x38] sm:$0xff]  ;;  %v53_v14 = vld [vmem:[%s2515_s1 + $0x40] sm:$0xff]  ;;  %v54_v15 = vld [vmem:[%s2515_s1 + $0x48] sm:$0xff]  ;;  %s40_s15 = sshll.u32 %s2196_s14, 4  ;;  %p2140_p8 = scmp.ne.s32.totalorder %s2517_s3, %s2139_s18  ;;  %s41_s15 = int_to_ptr.vmem [resolvable:$true] %s40_s15 }
  0x17   :  { %2029 = vmatpush3.bf16.msra.mxu0 %v2028_v5  ;;  %v2037_v13 = vpack.c.bf16 %v52_v12, %v51_v11  ;;  %v2040_v16 = vpack.c.bf16 %v54_v15, %v53_v14  ;;  %v55_v17 = vld [vmem:[%s2515_s1 + $0x50] sm:$0xff]  ;;  %v56_v18 = vld [vmem:[%s2515_s1 + $0x58] sm:$0xff]  ;;  %v57_v20 = vld [vmem:[%s2515_s1 + $0x60] sm:$0xff]  ;;  %p2143_p9 = scmp.lt.u32.totalorder %s2139_s18, %s2517_s3 }
  0x18   :  { %2030 = vmatprep.subr.bf16.mxu0 %v2192_v0  ;;  %v2043_v19 = vpack.c.bf16 %v56_v18, %v55_v17  ;;  %v58_v21 = vld [vmem:[%s2515_s1 + $0x68] sm:$0xff]  ;;  %v59_v23 = vld [vmem:[%s2515_s1 + $0x70] sm:$0xff]  ;;  %v60_v24 = vld [vmem:[%s2515_s1 + $0x78] sm:$0xff] }
  0x19   :  { %v2046_v22 = vpack.c.bf16 %v58_v21, %v57_v20  ;;  %v2049_v25 = vpack.c.bf16 %v60_v24, %v59_v23  ;;  %v2291_v26 = vld [vmem:[%s2514_s0] sm:$0xff]  ;;  %v209_v37 = vld [vmem:[#allocation4 + $0x8] sm:$0xff]  ;;  %p2145_p10 = pnand %p2143_p9, %p2140_p8 }
  0x1a   :  { %v208_v35 = vld [vmem:[#allocation4] sm:$0xff]  ;;  %v217_v39 = vld [vmem:[#allocation4 + $0x48] sm:$0xff]  ;;  %v195_v55 = vand.u32 2147483647, %v2291_v26 }
  0x1b   :  { %2032 = vmatpush3.bf16.msra.mxu0 %v2031_v7  ;;  %v216_v36 = vld [vmem:[#allocation4 + $0x40] sm:$0xff]  ;;  %v1744_v43 = vcombine.low %v209_v37, %v217_v39  ;;  %v1745_v44 = vcombine.high %v209_v37, %v217_v39  ;;  %v225_v46 = vld [vmem:[#allocation4 + $0x88] sm:$0xff] }
  0x1c   :  { %2033 = vmatprep.subr.bf16.mxu0 %v2192_v0  ;;  %v1743_v38 = vcombine.high %v208_v35, %v216_v36  ;;  %v1742_v40 = vcombine.low %v208_v35, %v216_v36  ;;  %v224_v41 = vld [vmem:[#allocation4 + $0x80] sm:$0xff]  ;;  %v233_v47 = vld [vmem:[#allocation4 + $0xc8] sm:$0xff] }
  0x1d   :  { %v232_v42 = vld [vmem:[#allocation4 + $0xc0] sm:$0xff]  ;;  %v1761_v48 = vcombine.high %v225_v46, %v233_v47  ;;  %v1760_v50 = vcombine.low %v225_v46, %v233_v47  ;;  %v241_v58 = vld [vmem:[#allocation4 + $0x108] sm:$0xff] }
  0x1e   :  { %v1759_v45 = vcombine.high %v224_v41, %v232_v42  ;;  %976 = vmatprep.subr.bf16.mxu1 %v1743_v38  ;;  %v1758_v49 = vcombine.low %v224_v41, %v232_v42  ;;  %v240_v56 = vld [vmem:[#allocation4 + $0x100] sm:$0xff]  ;;  %v249_v60 = vld [vmem:[#allocation4 + $0x148] sm:$0xff]  ;;  %v210_v41 = vld [vmem:[#allocation4 + $0x10] sm:$0xff] }
  0x1f   :  { %2035 = vmatpush3.bf16.msra.mxu0 %v2034_v10  ;;  %977 = vmatpush1.bf16.msra.mxu1 %v1742_v40  ;;  %v248_v57 = vld [vmem:[#allocation4 + $0x140] sm:$0xff]  ;;  %v1776_v62 = vcombine.low %v241_v58, %v249_v60  ;;  %v1777_v63 = vcombine.high %v241_v58, %v249_v60  ;;  %v257_v2 = vld [vmem:[#allocation4 + $0x188] sm:$0xff]  ;;  %v218_v42 = vld [vmem:[#allocation4 + $0x50] sm:$0xff] }
  0x20   :  { %2036 = vmatprep.subr.bf16.mxu0 %v2192_v0  ;;  %978 = vmatprep.subr.bf16.mxu1 %v1759_v45  ;;  %v1775_v59 = vcombine.high %v240_v56, %v248_v57  ;;  %v1774_v61 = vcombine.low %v240_v56, %v248_v57  ;;  %v264_v1 = vld [vmem:[#allocation4 + $0x1c0] sm:$0xff]  ;;  %v265_v4 = vld [vmem:[#allocation4 + $0x1c8] sm:$0xff]  ;;  %v219_v45 = vld [vmem:[#allocation4 + $0x58] sm:$0xff]  ;;  %v1746_v46 = vcombine.low %v210_v41, %v218_v42 }
  0x21   :  { %v1792_v5 = vcombine.low %v257_v2, %v265_v4  ;;  %v1793_v6 = vcombine.high %v257_v2, %v265_v4  ;;  %v272_v8 = vld [vmem:[#allocation4 + $0x200] sm:$0xff]  ;;  %v273_v10 = vld [vmem:[#allocation4 + $0x208] sm:$0xff]  ;;  %v227_v2 = vld [vmem:[#allocation4 + $0x98] sm:$0xff] }
  0x22   :  { %v280_v9 = vld [vmem:[#allocation4 + $0x240] sm:$0xff]  ;;  %v281_v12 = vld [vmem:[#allocation4 + $0x248] sm:$0xff] }
  0x23   :  { %2038 = vmatpush3.bf16.msra.mxu0 %v2037_v13  ;;  %979 = vmatpush1.bf16.msra.mxu1 %v1758_v49  ;;  %v1807_v11 = vcombine.high %v272_v8, %v280_v9  ;;  %v1808_v13 = vcombine.low %v273_v10, %v281_v12  ;;  %v1809_v14 = vcombine.high %v273_v10, %v281_v12  ;;  %v296_v17 = vld [vmem:[#allocation4 + $0x2c0] sm:$0xff]  ;;  %v289_v18 = vld [vmem:[#allocation4 + $0x288] sm:$0xff]  ;;  %v2195_v49 = vmov 0   ;;  %v243_v10 = vld [vmem:[#allocation4 + $0x118] sm:$0xff] }
  0x24   :  { %2039 = vmatprep.subr.bf16.mxu0 %v2192_v0  ;;  %980 = vmatprep.subr.bf16.mxu1 %v1775_v59  ;;  %v1806_v15 = vcombine.low %v272_v8, %v280_v9  ;;  %v297_v20 = vld [vmem:[#allocation4 + $0x2c8] sm:$0xff]  ;;  %v304_v24 = vld [vmem:[#allocation4 + $0x300] sm:$0xff]  ;;  %v242_v8 = vld [vmem:[#allocation4 + $0x110] sm:$0xff] }
  0x25   :  { %v1824_v21 = vcombine.low %v289_v18, %v297_v20  ;;  %v321_v35 = vld [vmem:[#allocation4 + $0x388] sm:$0xff]  ;;  %1008 = vmatprep.mubr.bf16.mxu1 %v2195_v49  ;;  %v250_v9 = vld [vmem:[#allocation4 + $0x150] sm:$0xff] }
  0x26   :  { %v329_v37 = vld [vmem:[#allocation4 + $0x3c8] sm:$0xff] }
  0x27   :  { %2041 = vmatpush3.bf16.msra.mxu0 %v2040_v16  ;;  %981 = vmatpush1.bf16.msra.mxu1 %v1774_v61  ;;  %v288_v16 = vld [vmem:[#allocation4 + $0x280] sm:$0xff]  ;;  %v1856_v38 = vcombine.low %v321_v35, %v329_v37  ;;  %v1857_v39 = vcombine.high %v321_v35, %v329_v37  ;;  %v299_v35 = vld [vmem:[#allocation4 + $0x2d8] sm:$0xff] }
  0x28   :  { %2042 = vmatprep.subr.bf16.mxu0 %v2192_v0  ;;  %v1822_v23 = vcombine.low %v288_v16, %v296_v17 }
  0x2b   :  { %2044 = vmatpush3.bf16.msra.mxu0 %v2043_v19  ;;  %v1823_v19 = vcombine.high %v288_v16, %v296_v17  ;;  %v266_v16 = vld [vmem:[#allocation4 + $0x1d0] sm:$0xff]  ;;  %v259_v17 = vld [vmem:[#allocation4 + $0x198] sm:$0xff] }
  0x2c   :  { %2045 = vmatprep.subr.bf16.mxu0 %v2192_v0 }
  0x2f   :  { %2047 = vmatpush3.bf16.msra.mxu0 %v2046_v22  ;;  %v1825_v22 = vcombine.high %v289_v18, %v297_v20  ;;  %v267_v18 = vld [vmem:[#allocation4 + $0x1d8] sm:$0xff] }
  0x30   :  { %2048 = vmatprep.subr.bf16.mxu0 %v2192_v0  ;;  %v256_v0 = vld [vmem:[#allocation4 + $0x180] sm:$0xff] }
  0x31   :  { %v1791_v3 = vcombine.high %v256_v0, %v264_v1  ;;  %v1790_v7 = vcombine.low %v256_v0, %v264_v1  ;;  %v226_v0 = vld [vmem:[#allocation4 + $0x90] sm:$0xff] }
  0x32   :  { %v234_v1 = vld [vmem:[#allocation4 + $0xd0] sm:$0xff] }
  0x33   :  { %2050 = vmatpush3.bf16.msra.mxu0 %v2049_v25  ;;  %982 = vmatprep.subr.bf16.mxu1 %v1791_v3  ;;  %v312_v25 = vld [vmem:[#allocation4 + $0x340] sm:$0xff]  ;;  %v235_v3 = vld [vmem:[#allocation4 + $0xd8] sm:$0xff] }
  0x34   :  { %1017 = vmatprep.subr.bf16.mxu0 %v1745_v44  ;;  %983 = vmatpush1.bf16.msra.mxu1 %v1790_v7  ;;  %v1747_v44 = vcombine.high %v210_v41, %v218_v42  ;;  %v1765_v7 = vcombine.high %v227_v2, %v235_v3  ;;  %v1764_v12 = vcombine.low %v227_v2, %v235_v3  ;;  %v314_v41 = vld [vmem:[#allocation4 + $0x350] sm:$0xff]  ;;  %v307_v42 = vld [vmem:[#allocation4 + $0x318] sm:$0xff]  ;;  %v213_v2 = vld [vmem:[#allocation4 + $0x28] sm:$0xff] }
  0x35   :  { %984 = vmatprep.subr.bf16.mxu1 %v1807_v11  ;;  %v251_v11 = vld [vmem:[#allocation4 + $0x158] sm:$0xff]  ;;  %v221_v3 = vld [vmem:[#allocation4 + $0x68] sm:$0xff] }
  0x36   :  { %2025 = vmatmul.mubr.f32.vlgmr.msra.gmra.mrb[0].mxu0 %v2291_v26  ;;  %v1780_v20 = vcombine.low %v243_v10, %v251_v11 }
  0x37   :  { %1018 = vmatpush1.bf16.msra.mxu0 %v1744_v43  ;;  %v211_v43 = vld [vmem:[#allocation4 + $0x18] sm:$0xff]  ;;  %1049 = vmatprep.mubr.bf16.mxu0 %v2195_v49 }
  0x38   :  { %1019 = vmatprep.subr.bf16.mxu0 %v1761_v48  ;;  %985 = vmatpush1.bf16.msra.mxu1 %v1806_v15  ;;  %v1748_v47 = vcombine.low %v211_v43, %v219_v45  ;;  %v1749_v48 = vcombine.high %v211_v43, %v219_v45  ;;  %v258_v15 = vld [vmem:[#allocation4 + $0x190] sm:$0xff]  ;;  %v315_v43 = vld [vmem:[#allocation4 + $0x358] sm:$0xff] }
  0x39   :  { %986 = vmatprep.subr.bf16.mxu1 %v1823_v19  ;;  %v1778_v19 = vcombine.low %v242_v8, %v250_v9 }
  0x3b   :  { %1020 = vmatpush1.bf16.msra.mxu0 %v1760_v50  ;;  %v143_v50 = vlaneseq }
  0x3c   :  { %1021 = vmatprep.subr.bf16.mxu0 %v1777_v63  ;;  %987 = vmatpush1.bf16.msra.mxu1 %v1822_v23  ;;  %v274_v23 = vld [vmem:[#allocation4 + $0x210] sm:$0xff] }
  0x3f   :  { %1022 = vmatpush1.bf16.msra.mxu0 %v1776_v62 }
  0x40   :  { %1023 = vmatprep.subr.bf16.mxu0 %v1793_v6  ;;  %v1763_v6 = vcombine.high %v226_v0, %v234_v1 }
  0x43   :  { %1024 = vmatpush1.bf16.msra.mxu0 %v1792_v5 }
  0x44   :  { %1025 = vmatprep.subr.bf16.mxu0 %v1809_v14  ;;  %v1781_v14 = vcombine.high %v243_v10, %v251_v11  ;;  %v236_v10 = vld [vmem:[#allocation4 + $0xe0] sm:$0xff]  ;;  %v229_v11 = vld [vmem:[#allocation4 + $0xa8] sm:$0xff] }
  0x47   :  { %1026 = vmatpush1.bf16.msra.mxu0 %v1808_v13  ;;  %v1779_v13 = vcombine.high %v242_v8, %v250_v9  ;;  %v1753_v8 = vcombine.high %v213_v2, %v221_v3  ;;  %v228_v9 = vld [vmem:[#allocation4 + $0xa0] sm:$0xff] }
  0x48   :  { %1027 = vmatprep.subr.bf16.mxu0 %v1825_v22  ;;  %v1797_v22 = vcombine.high %v259_v17, %v267_v18 }
  0x4b   :  { %1028 = vmatpush1.bf16.msra.mxu0 %v1824_v21  ;;  %v1795_v21 = vcombine.high %v258_v15, %v266_v16 }
 0x109   :  { %v127_v27 = vpop.f32.mrb[0].mxu0 }
 0x10a   :  { %v2026_v28 = vpop.f32.mrb[1].mxu0  ;;  %v132_v29 = vsel %vm131_vm1, %v127_v27, -inf }
 0x10b   :  { %133 = vmax.xlane.f32.xlu0 %v132_v29  ;;  %v1839_v28 = vcombine.high %v304_v24, %v312_v25  ;;  %v313_v29 = vld [vmem:[#allocation4 + $0x348] sm:$0xff] }
 0x10d   :  { %988 = vmatprep.subr.bf16.mxu1 %v1839_v28  ;;  %v1794_v28 = vcombine.low %v258_v15, %v266_v16  ;;  %v244_v16 = vld [vmem:[#allocation4 + $0x120] sm:$0xff] }
 0x198   :  { %v134_v30 = vpop.xlane.xlu0 %133 }
 0x199   :  { %v135_v31 = vsub.f32 %v127_v27, %v134_v30  ;;  %v305_v27 = vld [vmem:[#allocation4 + $0x308] sm:$0xff] }
 0x19a   :  { %v1840_v30 = vcombine.low %v305_v27, %v313_v29 }
 0x19b   :  { %v136_v32 = vmul.f32 1.442695, %v135_v31  ;;  %v1841_v31 = vcombine.high %v305_v27, %v313_v29  ;;  %v283_v27 = vld [vmem:[#allocation4 + $0x258] sm:$0xff]  ;;  %v1796_v29 = vcombine.low %v259_v17, %v267_v18  ;;  %v252_v17 = vld [vmem:[#allocation4 + $0x160] sm:$0xff]  ;;  %v245_v18 = vld [vmem:[#allocation4 + $0x128] sm:$0xff] }
 0x19d   :  { %2069 = vpow2.f32 %v136_v32  ;;  %v1838_v32 = vcombine.low %v304_v24, %v312_v25  ;;  %1029 = vmatprep.subr.bf16.mxu0 %v1841_v31  ;;  %v282_v24 = vld [vmem:[#allocation4 + $0x250] sm:$0xff]  ;;  %v275_v25 = vld [vmem:[#allocation4 + $0x218] sm:$0xff] }
 0x19e   :  { %1030 = vmatpush1.bf16.msra.mxu0 %v1840_v30  ;;  %v1811_v30 = vcombine.high %v274_v23, %v282_v24  ;;  %v1813_v31 = vcombine.high %v275_v25, %v283_v27  ;;  %v1812_v37 = vcombine.low %v275_v25, %v283_v27  ;;  %v268_v25 = vld [vmem:[#allocation4 + $0x1e0] sm:$0xff]  ;;  %v261_v27 = vld [vmem:[#allocation4 + $0x1a8] sm:$0xff] }
 0x19f   :  { %989 = vmatpush1.bf16.msra.mxu1 %v1838_v32  ;;  %1031 = vmatprep.subr.bf16.mxu0 %v1857_v39  ;;  %v290_v32 = vld [vmem:[#allocation4 + $0x290] sm:$0xff] }
 0x1a2   :  { %1032 = vmatpush1.bf16.msra.mxu0 %v1856_v38 }
 0x1a3   :  { %1099 = vmatprep.subr.bf16.mxu0 %v1749_v48  ;;  %v322_v48 = vld [vmem:[#allocation4 + $0x390] sm:$0xff] }
 0x1a7   :  { %v2070_v33 = vpop.eup %2069 }
 0x1a8   :  { %v138_v34 = vsel %vm131_vm1, %v2070_v33, 0.0 }
 0x1a9   :  { %139 = vadd.xlane.f32.xlu0 %v138_v34  ;;  %v328_v34 = vld [vmem:[#allocation4 + $0x3c0] sm:$0xff] }
 0x236   :  { %v140_v51 = vpop.xlane.xlu0 %139 }
 0x237   :  { %2071 = vrcp.f32 %v140_v51  ;;  %v2303_v51 = vand.u32 127, %v143_v50  ;;  %v330_v50 = vld [vmem:[#allocation4 + $0x3d0] sm:$0xff] }
 0x241   :  { %v2072_v52 = vpop.eup %2071 }
 0x242   :  { %v2296_v53 = vmul.f32 %v2072_v52, %v2070_v33  ;;  %v320_v33 = vld [vmem:[#allocation4 + $0x380] sm:$0xff] }
 0x243   :  { %v1855_v36 = vcombine.high %v320_v33, %v328_v34  ;;  %v1854_v40 = vcombine.low %v320_v33, %v328_v34  ;;  %v298_v33 = vld [vmem:[#allocation4 + $0x2d0] sm:$0xff]  ;;  %v291_v34 = vld [vmem:[#allocation4 + $0x298] sm:$0xff] }
 0x244   :  { %v145_v54 = vsel %vm131_vm1, %v2296_v53, -inf  ;;  %v1827_v38 = vcombine.high %v290_v32, %v298_v33  ;;  %v1829_v39 = vcombine.high %v291_v34, %v299_v35  ;;  %v1828_v45 = vcombine.low %v291_v34, %v299_v35  ;;  %v284_v34 = vld [vmem:[#allocation4 + $0x260] sm:$0xff]  ;;  %v277_v35 = vld [vmem:[#allocation4 + $0x228] sm:$0xff] }
 0x245   :  { %146 = vmax.xlane.f32.xlu1 %v145_v54  ;;  %990 = vmatprep.subr.bf16.mxu1 %v1855_v36  ;;  %v1810_v36 = vcombine.low %v274_v23, %v282_v24  ;;  %v260_v24 = vld [vmem:[#allocation4 + $0x1a0] sm:$0xff] }
 0x246   :  { %991 = vmatpush1.bf16.msra.mxu1 %v1854_v40  ;;  %v306_v40 = vld [vmem:[#allocation4 + $0x310] sm:$0xff] }
 0x247   :  { %1058 = vmatprep.subr.bf16.mxu1 %v1747_v44  ;;  %v1826_v44 = vcombine.low %v290_v32, %v298_v33  ;;  %v276_v33 = vld [vmem:[#allocation4 + $0x220] sm:$0xff] }
 0x249   :  { %196 = vmax.xlane.f32.xlu1 %v195_v55 }
 0x2d2   :  { %v2305_v52 = vpop.xlane.xlu1 %146 }
 0x2d3   :  { %vm148_vm2 = vcmp.eq.f32.partialorder %v2296_v53, %v2305_v52 }
 0x2d4   :  { %v149_v54 = vsel %vm148_vm2, %v2303_v51, 4 }
 0x2d5   :  { %v2311_v55 = vsel %vm131_vm1, %v149_v54, 2147483647  ;;  %v323_v54 = vld [vmem:[#allocation4 + $0x398] sm:$0xff] }
 0x2d6   :  { %v2313_v56 = vpop.xlane.xlu1 %196  ;;  %v152_v57 = vshra.s32 %v2311_v55, 16 }
 0x2d7   :  { %v198_v58 = vmax.f32 %v2313_v56, 1e-06 }
 0x2d8   :  { %v2317_v59 = vcvt.s32.f32 %v152_v57  ;;  %v331_v57 = vld [vmem:[#allocation4 + $0x3d8] sm:$0xff] }
 0x2d9   :  { %2073 = vrcp.f32 %v198_v58 }
 0x2da   :  { %155 = vmin.xlane.f32.xlu0 %v2317_v59 }
 0x2e3   :  { %v2074_v60 = vpop.eup %2073 }
 0x2e4   :  { %v200_v61 = vmul.f32 127.0, %v2074_v60  ;;  %v1842_v60 = vcombine.low %v306_v40, %v314_v41 }
 0x2e6   :  { %v201_v62 = vmul.f32 %v200_v61, %v2291_v26  ;;  %v1762_v26 = vcombine.low %v226_v0, %v234_v1  ;;  %v1844_v61 = vcombine.low %v307_v42, %v315_v43  ;;  %v212_v0 = vld [vmem:[#allocation4 + $0x20] sm:$0xff] }
 0x2e7   :  { %v220_v1 = vld [vmem:[#allocation4 + $0x60] sm:$0xff] }
 0x2e8   :  { %v2051_v63 = vround.rtne.f32 %v201_v62  ;;  %v1859_v62 = vcombine.high %v322_v48, %v330_v50 }
 0x2ea   :  { %v1741_v4 = vclamps-f32 %v2051_v63, 127.0  ;;  %v1861_v63 = vcombine.high %v323_v54, %v331_v57 }
 0x2ec   :  { %v2323_v5 = vpack.c.bf16 %v1741_v4, %v1741_v4  ;;  %v1858_v4 = vcombine.low %v322_v48, %v330_v50  ;;  %v308_v50 = vld [vmem:[#allocation4 + $0x320] sm:$0xff] }
 0x2ee   :  { %1009 = vmatmul.mubr.bf16.vlgmr.msra.gmra.mrb[0].mxu1 %v2323_v5  ;;  %1050 = vmatmul.mubr.bf16.vlgmr.msra.gmra.mrb[4].mxu0 %v2323_v5 }
 0x2ef   :  { %1059 = vmatpush1.bf16.msra.mxu1 %v1746_v46  ;;  %1100 = vmatpush1.bf16.msra.mxu0 %v1748_v47  ;;  %v1843_v46 = vcombine.high %v306_v40, %v314_v41  ;;  %v1845_v47 = vcombine.high %v307_v42, %v315_v43  ;;  %v292_v41 = vld [vmem:[#allocation4 + $0x2a0] sm:$0xff]  ;;  %v293_v43 = vld [vmem:[#allocation4 + $0x2a8] sm:$0xff] }
 0x2f0   :  { %1060 = vmatprep.subr.bf16.mxu1 %v1763_v6  ;;  %1101 = vmatprep.subr.bf16.mxu0 %v1765_v7  ;;  %v1860_v6 = vcombine.low %v323_v54, %v331_v57  ;;  %v1751_v7 = vcombine.high %v212_v0, %v220_v1  ;;  %v300_v42 = vld [vmem:[#allocation4 + $0x2e0] sm:$0xff]  ;;  %v309_v57 = vld [vmem:[#allocation4 + $0x328] sm:$0xff] }
 0x2f1   :  { %1090 = vmatprep.mubr.bf16.mxu1 %v2195_v49  ;;  %1131 = vmatprep.mubr.bf16.mxu0 %v2195_v49  ;;  %v316_v54 = vld [vmem:[#allocation4 + $0x360] sm:$0xff] }
 0x2f3   :  { %1061 = vmatpush1.bf16.msra.mxu1 %v1762_v26  ;;  %1102 = vmatpush1.bf16.msra.mxu0 %v1764_v12  ;;  %v237_v26 = vld [vmem:[#allocation4 + $0xe8] sm:$0xff]  ;;  %v1750_v12 = vcombine.low %v212_v0, %v220_v1  ;;  %v324_v1 = vld [vmem:[#allocation4 + $0x3a0] sm:$0xff] }
 0x2f4   :  { %1062 = vmatprep.subr.bf16.mxu1 %v1779_v13  ;;  %1103 = vmatprep.subr.bf16.mxu0 %v1781_v14  ;;  %v1752_v13 = vcombine.low %v213_v2, %v221_v3  ;;  %v1767_v14 = vcombine.high %v228_v9, %v236_v10  ;;  %v1769_v15 = vcombine.high %v229_v11, %v237_v26  ;;  %v332_v2 = vld [vmem:[#allocation4 + $0x3e0] sm:$0xff]  ;;  %v325_v3 = vld [vmem:[#allocation4 + $0x3a8] sm:$0xff] }
 0x2f7   :  { %1063 = vmatpush1.bf16.msra.mxu1 %v1778_v19  ;;  %1104 = vmatpush1.bf16.msra.mxu0 %v1780_v20  ;;  %v253_v19 = vld [vmem:[#allocation4 + $0x168] sm:$0xff]  ;;  %v1766_v20 = vcombine.low %v228_v9, %v236_v10  ;;  %v214_v10 = vld [vmem:[#allocation4 + $0x30] sm:$0xff] }
 0x2f8   :  { %1064 = vmatprep.subr.bf16.mxu1 %v1795_v21  ;;  %1105 = vmatprep.subr.bf16.mxu0 %v1797_v22  ;;  %v1768_v21 = vcombine.low %v229_v11, %v237_v26  ;;  %v1783_v22 = vcombine.high %v244_v16, %v252_v17  ;;  %v1785_v23 = vcombine.high %v245_v18, %v253_v19  ;;  %v222_v11 = vld [vmem:[#allocation4 + $0x70] sm:$0xff]  ;;  %v215_v26 = vld [vmem:[#allocation4 + $0x38] sm:$0xff] }
 0x2fb   :  { %1065 = vmatpush1.bf16.msra.mxu1 %v1794_v28  ;;  %1106 = vmatpush1.bf16.msra.mxu0 %v1796_v29  ;;  %v269_v28 = vld [vmem:[#allocation4 + $0x1e8] sm:$0xff]  ;;  %v1782_v29 = vcombine.low %v244_v16, %v252_v17  ;;  %v230_v17 = vld [vmem:[#allocation4 + $0xb0] sm:$0xff] }
 0x2fc   :  { %1066 = vmatprep.subr.bf16.mxu1 %v1811_v30  ;;  %1107 = vmatprep.subr.bf16.mxu0 %v1813_v31  ;;  %v1784_v30 = vcombine.low %v245_v18, %v253_v19  ;;  %v1799_v31 = vcombine.high %v260_v24, %v268_v25  ;;  %v1801_v32 = vcombine.high %v261_v27, %v269_v28  ;;  %v238_v18 = vld [vmem:[#allocation4 + $0xf0] sm:$0xff]  ;;  %v231_v19 = vld [vmem:[#allocation4 + $0xb8] sm:$0xff] }
 0x2ff   :  { %1067 = vmatpush1.bf16.msra.mxu1 %v1810_v36  ;;  %1108 = vmatpush1.bf16.msra.mxu0 %v1812_v37  ;;  %v285_v36 = vld [vmem:[#allocation4 + $0x268] sm:$0xff]  ;;  %v1798_v37 = vcombine.low %v260_v24, %v268_v25  ;;  %v246_v25 = vld [vmem:[#allocation4 + $0x130] sm:$0xff] }
 0x300   :  { %1068 = vmatprep.subr.bf16.mxu1 %v1827_v38  ;;  %1109 = vmatprep.subr.bf16.mxu0 %v1829_v39  ;;  %v1800_v38 = vcombine.low %v261_v27, %v269_v28  ;;  %v1815_v39 = vcombine.high %v276_v33, %v284_v34  ;;  %v1817_v40 = vcombine.high %v277_v35, %v285_v36  ;;  %v254_v27 = vld [vmem:[#allocation4 + $0x170] sm:$0xff]  ;;  %v247_v28 = vld [vmem:[#allocation4 + $0x138] sm:$0xff] }
 0x303   :  { %1069 = vmatpush1.bf16.msra.mxu1 %v1826_v44  ;;  %1110 = vmatpush1.bf16.msra.mxu0 %v1828_v45  ;;  %v301_v44 = vld [vmem:[#allocation4 + $0x2e8] sm:$0xff]  ;;  %v1814_v45 = vcombine.low %v276_v33, %v284_v34  ;;  %v262_v34 = vld [vmem:[#allocation4 + $0x1b0] sm:$0xff] }
 0x304   :  { %1070 = vmatprep.subr.bf16.mxu1 %v1843_v46  ;;  %1111 = vmatprep.subr.bf16.mxu0 %v1845_v47  ;;  %v1816_v46 = vcombine.low %v277_v35, %v285_v36  ;;  %v1831_v47 = vcombine.high %v292_v41, %v300_v42  ;;  %v1833_v48 = vcombine.high %v293_v43, %v301_v44  ;;  %v270_v35 = vld [vmem:[#allocation4 + $0x1f0] sm:$0xff]  ;;  %v263_v36 = vld [vmem:[#allocation4 + $0x1b8] sm:$0xff] }
 0x307   :  { %1071 = vmatpush1.bf16.msra.mxu1 %v1842_v60  ;;  %1112 = vmatpush1.bf16.msra.mxu0 %v1844_v61  ;;  %v317_v60 = vld [vmem:[#allocation4 + $0x368] sm:$0xff]  ;;  %v1830_v61 = vcombine.low %v292_v41, %v300_v42  ;;  %v278_v42 = vld [vmem:[#allocation4 + $0x230] sm:$0xff] }
 0x308   :  { %1072 = vmatprep.subr.bf16.mxu1 %v1859_v62  ;;  %1113 = vmatprep.subr.bf16.mxu0 %v1861_v63  ;;  %v1832_v62 = vcombine.low %v293_v43, %v301_v44  ;;  %v1847_v63 = vcombine.high %v308_v50, %v316_v54  ;;  %v1849_v0 = vcombine.high %v309_v57, %v317_v60  ;;  %v286_v43 = vld [vmem:[#allocation4 + $0x270] sm:$0xff]  ;;  %v279_v44 = vld [vmem:[#allocation4 + $0x238] sm:$0xff] }
 0x30b   :  { %1073 = vmatpush1.bf16.msra.mxu1 %v1858_v4  ;;  %1114 = vmatpush1.bf16.msra.mxu0 %v1860_v6  ;;  %v333_v4 = vld [vmem:[#allocation4 + $0x3e8] sm:$0xff]  ;;  %v1846_v6 = vcombine.low %v308_v50, %v316_v54  ;;  %v294_v50 = vld [vmem:[#allocation4 + $0x2b0] sm:$0xff] }
 0x30c   :  { %1140 = vmatprep.subr.bf16.mxu1 %v1751_v7  ;;  %1181 = vmatprep.subr.bf16.mxu0 %v1753_v8  ;;  %v1848_v7 = vcombine.low %v309_v57, %v317_v60  ;;  %v1863_v8 = vcombine.high %v324_v1, %v332_v2  ;;  %v1865_v9 = vcombine.high %v325_v3, %v333_v4  ;;  %v302_v54 = vld [vmem:[#allocation4 + $0x2f0] sm:$0xff]  ;;  %v295_v57 = vld [vmem:[#allocation4 + $0x2b8] sm:$0xff] }
 0x30d   :  { %v303_v60 = vld [vmem:[#allocation4 + $0x2f8] sm:$0xff] }
 0x30e   :  { %1091 = vmatmul.mubr.bf16.vlgmr.msra.gmra.mrb[4].mxu1 %v2323_v5  ;;  %1132 = vmatmul.mubr.bf16.vlgmr.msra.gmra.mrb[8].mxu0 %v2323_v5 }
 0x30f   :  { %1141 = vmatpush1.bf16.msra.mxu1 %v1750_v12  ;;  %1182 = vmatpush1.bf16.msra.mxu0 %v1752_v13  ;;  %v223_v12 = vld [vmem:[#allocation4 + $0x78] sm:$0xff]  ;;  %v1862_v13 = vcombine.low %v324_v1, %v332_v2  ;;  %v310_v1 = vld [vmem:[#allocation4 + $0x330] sm:$0xff] }
 0x310   :  { %1142 = vmatprep.subr.bf16.mxu1 %v1767_v14  ;;  %1183 = vmatprep.subr.bf16.mxu0 %v1769_v15  ;;  %v1864_v14 = vcombine.low %v325_v3, %v333_v4  ;;  %v1755_v15 = vcombine.high %v214_v10, %v222_v11  ;;  %v1757_v16 = vcombine.high %v215_v26, %v223_v12  ;;  %v318_v2 = vld [vmem:[#allocation4 + $0x370] sm:$0xff]  ;;  %v311_v3 = vld [vmem:[#allocation4 + $0x338] sm:$0xff] }
 0x311   :  { %1172 = vmatprep.mubr.bf16.mxu1 %v2195_v49  ;;  %1213 = vmatprep.mubr.bf16.mxu0 %v2195_v49  ;;  %v319_v4 = vld [vmem:[#allocation4 + $0x378] sm:$0xff] }
 0x313   :  { %1143 = vmatpush1.bf16.msra.mxu1 %v1766_v20  ;;  %1184 = vmatpush1.bf16.msra.mxu0 %v1768_v21  ;;  %v239_v20 = vld [vmem:[#allocation4 + $0xf8] sm:$0xff]  ;;  %v1754_v21 = vcombine.low %v214_v10, %v222_v11  ;;  %v326_v10 = vld [vmem:[#allocation4 + $0x3b0] sm:$0xff] }
 0x314   :  { %1144 = vmatprep.subr.bf16.mxu1 %v1783_v22  ;;  %1185 = vmatprep.subr.bf16.mxu0 %v1785_v23  ;;  %v1756_v22 = vcombine.low %v215_v26, %v223_v12  ;;  %v1771_v23 = vcombine.high %v230_v17, %v238_v18  ;;  %v1773_v24 = vcombine.high %v231_v19, %v239_v20  ;;  %v334_v11 = vld [vmem:[#allocation4 + $0x3f0] sm:$0xff]  ;;  %v327_v26 = vld [vmem:[#allocation4 + $0x3b8] sm:$0xff] }
 0x315   :  { %v335_v12 = vld [vmem:[#allocation4 + $0x3f8] sm:$0xff] }
 0x317   :  { %1145 = vmatpush1.bf16.msra.mxu1 %v1782_v29  ;;  %1186 = vmatpush1.bf16.msra.mxu0 %v1784_v30  ;;  %v255_v29 = vld [vmem:[#allocation4 + $0x178] sm:$0xff]  ;;  %v1770_v30 = vcombine.low %v230_v17, %v238_v18  ;;  %v1866_v17 = vcombine.low %v326_v10, %v334_v11  ;;  %v1868_v18 = vcombine.low %v327_v26, %v335_v12 }
 0x318   :  { %1146 = vmatprep.subr.bf16.mxu1 %v1799_v31  ;;  %1187 = vmatprep.subr.bf16.mxu0 %v1801_v32  ;;  %v1772_v31 = vcombine.low %v231_v19, %v239_v20  ;;  %v1787_v32 = vcombine.high %v246_v25, %v254_v27  ;;  %v1789_v33 = vcombine.high %v247_v28, %v255_v29  ;;  %v151_v19 = vand.u32 65535, %v2311_v55 }
 0x31b   :  { %1147 = vmatpush1.bf16.msra.mxu1 %v1798_v37  ;;  %1188 = vmatpush1.bf16.msra.mxu0 %v1800_v38  ;;  %v271_v37 = vld [vmem:[#allocation4 + $0x1f8] sm:$0xff]  ;;  %v1786_v38 = vcombine.low %v246_v25, %v254_v27 }
 0x31c   :  { %1148 = vmatprep.subr.bf16.mxu1 %v1815_v39  ;;  %1189 = vmatprep.subr.bf16.mxu0 %v1817_v40  ;;  %v1788_v39 = vcombine.low %v247_v28, %v255_v29  ;;  %v1803_v40 = vcombine.high %v262_v34, %v270_v35  ;;  %v1805_v41 = vcombine.high %v263_v36, %v271_v37 }
 0x31f   :  { %1149 = vmatpush1.bf16.msra.mxu1 %v1814_v45  ;;  %1190 = vmatpush1.bf16.msra.mxu0 %v1816_v46  ;;  %v287_v45 = vld [vmem:[#allocation4 + $0x278] sm:$0xff]  ;;  %v1802_v46 = vcombine.low %v262_v34, %v270_v35 }
 0x320   :  { %1150 = vmatprep.subr.bf16.mxu1 %v1831_v47  ;;  %1191 = vmatprep.subr.bf16.mxu0 %v1833_v48  ;;  %v1804_v47 = vcombine.low %v263_v36, %v271_v37  ;;  %v1819_v48 = vcombine.high %v278_v42, %v286_v43 }
 0x323   :  { %1151 = vmatpush1.bf16.msra.mxu1 %v1830_v61  ;;  %1192 = vmatpush1.bf16.msra.mxu0 %v1832_v62  ;;  %v1818_v61 = vcombine.low %v278_v42, %v286_v43  ;;  %v1820_v62 = vcombine.low %v279_v44, %v287_v45 }
 0x324   :  { %1152 = vmatprep.subr.bf16.mxu1 %v1847_v63  ;;  %1193 = vmatprep.subr.bf16.mxu0 %v1849_v0  ;;  %v1835_v63 = vcombine.high %v294_v50, %v302_v54  ;;  %v1837_v0 = vcombine.high %v295_v57, %v303_v60 }
 0x327   :  { %1153 = vmatpush1.bf16.msra.mxu1 %v1846_v6  ;;  %1194 = vmatpush1.bf16.msra.mxu0 %v1848_v7  ;;  %v1834_v6 = vcombine.low %v294_v50, %v302_v54  ;;  %v1836_v7 = vcombine.low %v295_v57, %v303_v60 }
 0x328   :  { %1154 = vmatprep.subr.bf16.mxu1 %v1863_v8  ;;  %1195 = vmatprep.subr.bf16.mxu0 %v1865_v9  ;;  %v1851_v8 = vcombine.high %v310_v1, %v318_v2  ;;  %v1853_v9 = vcombine.high %v311_v3, %v319_v4 }
 0x32b   :  { %1155 = vmatpush1.bf16.msra.mxu1 %v1862_v13  ;;  %1196 = vmatpush1.bf16.msra.mxu0 %v1864_v14  ;;  %v1850_v13 = vcombine.low %v310_v1, %v318_v2  ;;  %v1852_v14 = vcombine.low %v311_v3, %v319_v4 }
 0x32c   :  { %1222 = vmatprep.subr.bf16.mxu1 %v1755_v15  ;;  %1263 = vmatprep.subr.bf16.mxu0 %v1757_v16  ;;  %v1867_v15 = vcombine.high %v326_v10, %v334_v11  ;;  %v1869_v16 = vcombine.high %v327_v26, %v335_v12 }
 0x32e   :  { %1173 = vmatmul.mubr.bf16.vlgmr.msra.gmra.mrb[8].mxu1 %v2323_v5  ;;  %1214 = vmatmul.mubr.bf16.vlgmr.msra.gmra.mrb[12].mxu0 %v2323_v5 }
 0x32f   :  { %1223 = vmatpush1.bf16.msra.mxu1 %v1754_v21  ;;  %1264 = vmatpush1.bf16.msra.mxu0 %v1756_v22  ;;  %v153_v21 = vcvt.s32.f32 %v151_v19 }
 0x330   :  { %1224 = vmatprep.subr.bf16.mxu1 %v1771_v23  ;;  %1265 = vmatprep.subr.bf16.mxu0 %v1773_v24  ;;  %v2343_v23 = vmul.f32 0.007874016, %v198_v58 }
 0x331   :  { %1254 = vmatprep.mubr.bf16.mxu1 %v2195_v49  ;;  %1295 = vmatprep.mubr.bf16.mxu0 %v2195_v49  ;;  %v1821_v49 = vcombine.high %v279_v44, %v287_v45 }
 0x333   :  { %1225 = vmatpush1.bf16.msra.mxu1 %v1770_v30  ;;  %1266 = vmatpush1.bf16.msra.mxu0 %v1772_v31 }
 0x334   :  { %1226 = vmatprep.subr.bf16.mxu1 %v1787_v32  ;;  %1267 = vmatprep.subr.bf16.mxu0 %v1789_v33 }
 0x337   :  { %1227 = vmatpush1.bf16.msra.mxu1 %v1786_v38  ;;  %1268 = vmatpush1.bf16.msra.mxu0 %v1788_v39 }
 0x338   :  { %1228 = vmatprep.subr.bf16.mxu1 %v1803_v40  ;;  %1269 = vmatprep.subr.bf16.mxu0 %v1805_v41 }
 0x33b   :  { %1229 = vmatpush1.bf16.msra.mxu1 %v1802_v46  ;;  %1270 = vmatpush1.bf16.msra.mxu0 %v1804_v47 }
 0x33c   :  { %1230 = vmatprep.subr.bf16.mxu1 %v1819_v48  ;;  %1271 = vmatprep.subr.bf16.mxu0 %v1821_v49 }
 0x33f   :  { %1231 = vmatpush1.bf16.msra.mxu1 %v1818_v61  ;;  %1272 = vmatpush1.bf16.msra.mxu0 %v1820_v62 }
 0x340   :  { %1232 = vmatprep.subr.bf16.mxu1 %v1835_v63  ;;  %1273 = vmatprep.subr.bf16.mxu0 %v1837_v0 }
 0x343   :  { %1233 = vmatpush1.bf16.msra.mxu1 %v1834_v6  ;;  %1274 = vmatpush1.bf16.msra.mxu0 %v1836_v7 }
 0x344   :  { %1234 = vmatprep.subr.bf16.mxu1 %v1851_v8  ;;  %1275 = vmatprep.subr.bf16.mxu0 %v1853_v9 }
 0x347   :  { %1235 = vmatpush1.bf16.msra.mxu1 %v1850_v13  ;;  %1276 = vmatpush1.bf16.msra.mxu0 %v1852_v14 }
 0x348   :  { %1236 = vmatprep.subr.bf16.mxu1 %v1867_v15  ;;  %1277 = vmatprep.subr.bf16.mxu0 %v1869_v16 }
 0x34b   :  { %1237 = vmatpush1.bf16.msra.mxu1 %v1866_v17  ;;  %1278 = vmatpush1.bf16.msra.mxu0 %v1868_v18 }
 0x34e   :  { %1255 = vmatmul.mubr.bf16.vlgmr.msra.gmra.mrb[12].mxu1 %v2323_v5  ;;  %1296 = vmatmul.mubr.bf16.vlgmr.msra.gmra.mrb[16].mxu0 %v2323_v5 }
 0x367   :  { %v156_v20 = vpop.xlane.xlu0 %155 }
 0x368   :  { %vm157_vm3 = vcmp.eq.f32.partialorder %v2317_v59, %v156_v20  ;;  %v162_v63 = vcvt.f32.s32 %v156_v20 }
 0x369   :  { %v158_v22 = vsel %vm157_vm3, %v153_v21, inf }
 0x36a   :  { %159 = vmin.xlane.f32.xlu1 %v158_v22  ;;  %v163_v1 = vshll.u32 %v162_v63, 16 }
 0x3c1   :  { %v1010_v24 = vpop.f32.mrb[0].mxu1  ;;  %v1051_v25 = vpop.f32.mrb[4].mxu0 }
 0x3c2   :  { %v1304_v27 = vmul.f32 %v1010_v24, %v2343_v23  ;;  %v1306_v28 = vmul.f32 %v1051_v25, %v2343_v23  ;;  %v1012_v29 = vpop.f32.mrb[1].mxu1  ;;  %v1053_v5 = vpop.f32.mrb[5].mxu0 }
 0x3c3   :  { %v1305_v55 = vmul.f32 %v1012_v29, %v2343_v23  ;;  %v2349_v30 = vmul.f32 %v1053_v5, %v2343_v23  ;;  %v1014_v59 = vpop.f32.mrb[2].mxu1  ;;  %v1055_v31 = vpop.f32.mrb[6].mxu0 }
 0x3c4   :  { %v1015_v32 = vpop.f32.mrb[3].mxu1  ;;  %v1056_v33 = vpop.f32.mrb[7].mxu0  ;;  %v1870_v56 = vmul.f32 -1.442695, %v1304_v27  ;;  %v1872_v58 = vmul.f32 -1.442695, %v1306_v28 }
 0x3c5   :  { %v1871_v34 = vmul.f32 -1.442695, %v1305_v55  ;;  %v1873_v35 = vmul.f32 -1.442695, %v2349_v30 }
 0x3c6   :  { %2075 = vpow2.f32 %v1870_v56 }
 0x3c7   :  { %2077 = vpow2.f32 %v1872_v58 }
 0x3c8   :  { %2079 = vpow2.f32 %v1871_v34 }
 0x3c9   :  { %2081 = vpow2.f32 %v1873_v35 }
 0x3d0   :  { %v2076_v48 = vpop.eup %2075 }
 0x3d1   :  { %v2078_v49 = vpop.eup %2077  ;;  %v1344_v57 = vadd.f32 1.0, %v2076_v48 }
 0x3d2   :  { %v2080_v50 = vpop.eup %2079  ;;  %v1346_v60 = vadd.f32 1.0, %v2078_v49 }
 0x3d3   :  { %v2082_v54 = vpop.eup %2081  ;;  %v1345_v61 = vadd.f32 1.0, %v2080_v50  ;;  %2083 = vrcp.f32 %v1344_v57 }
 0x3d4   :  { %v1347_v62 = vadd.f32 1.0, %v2082_v54  ;;  %2085 = vrcp.f32 %v1346_v60 }
 0x3d5   :  { %2087 = vrcp.f32 %v1345_v61 }
 0x3d6   :  { %2089 = vrcp.f32 %v1347_v62 }
 0x3dd   :  { %v2084_v4 = vpop.eup %2083 }
 0x3de   :  { %v2086_v7 = vpop.eup %2085  ;;  %v1368_v13 = vmul.f32 %v2084_v4, %v1304_v27 }
 0x3df   :  { %v2088_v10 = vpop.eup %2087  ;;  %v1370_v14 = vmul.f32 %v2086_v7, %v1306_v28 }
 0x3e0   :  { %v2090_v26 = vpop.eup %2089  ;;  %v1369_v17 = vmul.f32 %v2088_v10, %v1305_v55 }
 0x3e1   :  { %v1092_v36 = vpop.f32.mrb[4].mxu1  ;;  %v1133_v37 = vpop.f32.mrb[8].mxu0  ;;  %v1371_v22 = vmul.f32 %v2090_v26, %v2349_v30 }
 0x3e2   :  { %v2353_v38 = vmul.f32 %v1092_v36, %v2343_v23  ;;  %v2356_v39 = vmul.f32 %v1133_v37, %v2343_v23  ;;  %v1094_v40 = vpop.f32.mrb[5].mxu1  ;;  %v1135_v41 = vpop.f32.mrb[9].mxu0 }
 0x3e3   :  { %v2359_v42 = vmul.f32 %v1094_v40, %v2343_v23  ;;  %v2362_v43 = vmul.f32 %v1135_v41, %v2343_v23  ;;  %v1096_v44 = vpop.f32.mrb[6].mxu1  ;;  %v1137_v45 = vpop.f32.mrb[10].mxu0 }
 0x3e4   :  { %v1097_v46 = vpop.f32.mrb[7].mxu1  ;;  %v1138_v47 = vpop.f32.mrb[11].mxu0  ;;  %v1874_v8 = vmul.f32 -1.442695, %v2353_v38  ;;  %v1876_v11 = vmul.f32 -1.442695, %v2356_v39 }
 0x3e5   :  { %v1875_v12 = vmul.f32 -1.442695, %v2359_v42  ;;  %v1877_v15 = vmul.f32 -1.442695, %v2362_v43 }
 0x3e6   :  { %2091 = vpow2.f32 %v1874_v8 }
 0x3e7   :  { %2093 = vpow2.f32 %v1876_v11 }
 0x3e8   :  { %2095 = vpow2.f32 %v1875_v12 }
 0x3e9   :  { %2097 = vpow2.f32 %v1877_v15 }
 0x3f0   :  { %v2092_v30 = vpop.eup %2091 }
 0x3f1   :  { %v2094_v33 = vpop.eup %2093  ;;  %v1348_v34 = vadd.f32 1.0, %v2092_v30 }
 0x3f2   :  { %v2096_v56 = vpop.eup %2095  ;;  %v1350_v35 = vadd.f32 1.0, %v2094_v33 }
 0x3f3   :  { %v2098_v58 = vpop.eup %2097  ;;  %v1349_v36 = vadd.f32 1.0, %v2096_v56  ;;  %2099 = vrcp.f32 %v1348_v34 }
 0x3f4   :  { %v1351_v37 = vadd.f32 1.0, %v2098_v58  ;;  %2101 = vrcp.f32 %v1350_v35 }
 0x3f5   :  { %2103 = vrcp.f32 %v1349_v36 }
 0x3f6   :  { %2105 = vrcp.f32 %v1351_v37 }
 0x3f7   :  { %v160_v0 = vpop.xlane.xlu1 %159 }
 0x3f8   :  { %v161_v2 = vcvt.f32.s32 %v160_v0 }
 0x3fa   :  { %v2364_v3 = vadd.s32 %v163_v1, %v161_v2 }
 0x3fc   :  { %vm165_vm4 = vcmp.eq.s32.totalorder %v2303_v51, %v2364_v3 }
 0x3fd   :  { %v2369_v6 = vsel %vm165_vm4, -1.0, %v2296_v53  ;;  %v2100_v40 = vpop.eup %2099 }
 0x3fe   :  { %v167_v9 = vsel %vm131_vm1, %v2369_v6, -inf  ;;  %v2102_v41 = vpop.eup %2101  ;;  %v1372_v48 = vmul.f32 %v2100_v40, %v2353_v38 }
 0x3ff   :  { %168 = vmax.xlane.f32.xlu0 %v167_v9  ;;  %v2104_v44 = vpop.eup %2103  ;;  %v1374_v49 = vmul.f32 %v2102_v41, %v2356_v39 }
 0x400   :  { %v2106_v45 = vpop.eup %2105  ;;  %v1373_v61 = vmul.f32 %v2104_v44, %v2359_v42 }
 0x401   :  { %v1174_v16 = vpop.f32.mrb[8].mxu1  ;;  %v1215_v53 = vpop.f32.mrb[12].mxu0  ;;  %v1375_v62 = vmul.f32 %v2106_v45, %v2362_v43 }
 0x402   :  { %v1312_v18 = vmul.f32 %v1174_v16, %v2343_v23  ;;  %v1314_v19 = vmul.f32 %v1215_v53, %v2343_v23  ;;  %v1176_v20 = vpop.f32.mrb[9].mxu1  ;;  %v1217_v21 = vpop.f32.mrb[13].mxu0 }
 0x403   :  { %v1313_v24 = vmul.f32 %v1176_v20, %v2343_v23  ;;  %v1315_v25 = vmul.f32 %v1217_v21, %v2343_v23  ;;  %v1178_v27 = vpop.f32.mrb[10].mxu1  ;;  %v1219_v28 = vpop.f32.mrb[14].mxu0 }
 0x404   :  { %v2382_v29 = vmul.f32 %v1368_v13, %v1312_v18  ;;  %v2384_v5 = vmul.f32 %v1370_v14, %v1314_v19  ;;  %v1179_v55 = vpop.f32.mrb[11].mxu1  ;;  %v1220_v59 = vpop.f32.mrb[15].mxu0 }
 0x405   :  { %v2386_v31 = vmul.f32 %v1369_v17, %v1313_v24  ;;  %v2388_v32 = vmul.f32 %v1371_v22, %v1315_v25 }
 0x421   :  { %v1256_v46 = vpop.f32.mrb[12].mxu1  ;;  %v1297_v47 = vpop.f32.mrb[16].mxu0 }
 0x422   :  { %v1316_v50 = vmul.f32 %v1256_v46, %v2343_v23  ;;  %v1318_v54 = vmul.f32 %v1297_v47, %v2343_v23  ;;  %v1258_v57 = vpop.f32.mrb[13].mxu1  ;;  %v1299_v60 = vpop.f32.mrb[17].mxu0 }
 0x423   :  { %v1317_v63 = vmul.f32 %v1258_v57, %v2343_v23  ;;  %v1319_v0 = vmul.f32 %v1299_v60, %v2343_v23  ;;  %v1260_v1 = vpop.f32.mrb[14].mxu1  ;;  %v1301_v2 = vpop.f32.mrb[18].mxu0 }
 0x424   :  { %v2398_v4 = vmul.f32 %v1372_v48, %v1316_v50  ;;  %v2400_v38 = vmul.f32 %v1374_v49, %v1318_v54  ;;  %v1261_v39 = vpop.f32.mrb[15].mxu1  ;;  %v1302_v7 = vpop.f32.mrb[19].mxu0 }
 0x425   :  { %v2402_v8 = vmul.f32 %v1373_v61, %v1317_v63  ;;  %v2404_v9 = vmul.f32 %v1375_v62, %v1319_v0 }
 0x48c   :  { %v169_v10 = vpop.xlane.xlu0 %168 }
 0x48d   :  { %vm170_vm5 = vcmp.eq.f32.partialorder %v2369_v6, %v169_v10  ;;  %v187_v42 = vadd.f32 %v169_v10, %v2305_v52 }
 0x48e   :  { %v171_v43 = vsel %vm170_vm5, %v2303_v51, 4 }
 0x48f   :  { %2107 = vrcp.f32 %v187_v42  ;;  %v172_v23 = vsel %vm131_vm1, %v171_v43, 2147483647 }
 0x490   :  { %v174_v11 = vshra.s32 %v172_v23, 16  ;;  %v173_v51 = vand.u32 65535, %v172_v23 }
 0x492   :  { %v176_v26 = vcvt.s32.f32 %v174_v11  ;;  %v175_v16 = vcvt.s32.f32 %v173_v51 }
 0x494   :  { %177 = vmin.xlane.f32.xlu1 %v176_v26 }
 0x499   :  { %v2108_v12 = vpop.eup %2107 }
 0x49a   :  { %v2411_v13 = vmul.f32 %v2108_v12, %v2305_v52  ;;  %v2413_v14 = vmul.f32 %v2108_v12, %v169_v10 }
 0x49c   :  { %v192_v6 = vsel %vm191_vm6, %v2411_v13, %v2413_v14 }
 0x49d   :  { %194 = vst.msk [vmem:[%s2519_s5] sm:$0xff] %vm193_vm7, %v192_v6 }
 0x521   :  { %v178_v15 = vpop.xlane.xlu1 %177 }
 0x522   :  { %vm179_vm8 = vcmp.eq.f32.partialorder %v176_v26, %v178_v15 }
 0x523   :  { %v180_v53 = vsel %vm179_vm8, %v175_v16, inf }
 0x524   :  { %181 = vmin.xlane.f32.xlu0 %v180_v53 }
 0x525   :  { %2148 = shalt.err (!%p2145_p10)  }
 0x526   :  { %s2149_s5 = scalar_lea.vmem %s41_s15, 8192  ;;  %p2154_p12 = scmp.lt.s32.totalorder %s41_s15, %s41_s15 }
 0x527   :  { %p2150_p11 = scmp.ne.s32.totalorder %s41_s15, %s2149_s5  ;;  %p2155_p13 = scmp.lt.s32.totalorder %s2149_s5, %s2149_s5 }
 0x529   :  { %p2156_p0 = por %p2155_p13, %p2154_p12 }
 0x52b   :  { %p2157_p1 = pnand %p2156_p0, %p2150_p11 }
 0x52d   :  { %2160 = shalt.err (!%p2157_p1)  }
 0x52e   :  { %43 = dma.hbm_to_vmem [thread:$0]  %s2517_s3, 8192, %s41_s15, [#allocation3]  ;;  %v184_v52 = vcvt.f32.s32 %v178_v15  ;;  %v1388_v21 = vand.u32 2147483647, %v2382_v29  ;;  %v1389_v22 = vand.u32 2147483647, %v2386_v31 }
 0x52f   :  { %v1469_v24 = vand.u32 2147483647, %v2384_v5  ;;  %v1470_v25 = vand.u32 2147483647, %v2388_v32  ;;  %v1551_v27 = vand.u32 2147483647, %v2398_v4 }
 0x530   :  { %v185_v18 = vshll.u32 %v184_v52, 16  ;;  %v1552_v28 = vand.u32 2147483647, %v2402_v8  ;;  %v1390_v55 = vmax.f32.f32 %v1388_v21, %v1389_v22  ;;  %v1633_v59 = vand.u32 2147483647, %v2400_v38 }
 0x531   :  { %v1634_v30 = vand.u32 2147483647, %v2404_v9 }
 0x5b1   :  { %v182_v17 = vpop.xlane.xlu0 %181 }
 0x5b2   :  { %v183_v19 = vcvt.f32.s32 %v182_v17 }
 0x5b4   :  { %v2432_v20 = vadd.s32 %v185_v18, %v183_v19 }
 0x5b5   :  { %2185 = dma.done.wait [#allocation3], 8192 }
 0x5b6   :  { %2186 = vsyncadd [#allocation3], 4294959104  ;;  %v1553_v33 = vmax.f32.f32 %v1551_v27, %v1552_v28  ;;  %1391 = vmax.xlane.f32.xlu0 %v1390_v55  ;;  %v1471_v56 = vmax.f32.f32 %v1469_v24, %v1470_v25  ;;  %v1635_v58 = vmax.f32.f32 %v1633_v59, %v1634_v30  ;;  %v1415_v34 = vld [vmem:[#allocation2 + $0x40] sm:$0xff]  ;;  %v1416_v36 = vld [vmem:[#allocation2 + $0x48] sm:$0xff]  ;;  %vm1464_vm9 = vcmp.eq.s32.totalorder %v2432_v20, 0  ;;  %s2197_s3 = smov [#allocation7]  }
 0x5b7   :  { %v1407_v35 = vld [vmem:[#allocation2] sm:$0xff]  ;;  %1904 = vmatprep.subr.bf16.mxu1 %v1415_v34  ;;  %v1408_v41 = vld [vmem:[#allocation2 + $0x8] sm:$0xff]  ;;  %v1417_v44 = vld [vmem:[#allocation2 + $0x50] sm:$0xff]  ;;  %vm1463_vm10 = vcmp.eq.s32.totalorder %v2364_v3, 0  ;;  %vm1545_vm11 = vcmp.eq.s32.totalorder %v2432_v20, 1  ;;  %vm1544_vm12 = vcmp.eq.s32.totalorder %v2364_v3, 1 }
 0x5b8   :  { %1554 = vmax.xlane.f32.xlu1 %v1553_v33  ;;  %v1496_v37 = vld [vmem:[#allocation2 + $0xc0] sm:$0xff]  ;;  %1905 = vmatpush3.bf16.msra.mxu1 %v1407_v35  ;;  %v1497_v45 = vld [vmem:[#allocation2 + $0xc8] sm:$0xff]  ;;  %v1409_v46 = vld [vmem:[#allocation2 + $0x10] sm:$0xff]  ;;  %vm1627_vm13 = vcmp.eq.s32.totalorder %v2432_v20, 2  ;;  %vm1626_vm14 = vcmp.eq.s32.totalorder %v2364_v3, 2  ;;  %vm1709_vm15 = vcmp.eq.s32.totalorder %v2432_v20, 3 }
 0x5b9   :  { %v1488_v40 = vld [vmem:[#allocation2 + $0x80] sm:$0xff]  ;;  %1926 = vmatprep.subr.bf16.mxu0 %v1496_v37  ;;  %1906 = vmatprep.subr.bf16.mxu1 %v1416_v36  ;;  %v1489_v47 = vld [vmem:[#allocation2 + $0x88] sm:$0xff]  ;;  %v1418_v48 = vld [vmem:[#allocation2 + $0x58] sm:$0xff]  ;;  %vm1708_vm0 = vcmp.eq.s32.totalorder %v2364_v3, 3  ;;  %s1722_s25 = sshll.u32 %s2197_s3, 4  ;;  %s1723_s25 = int_to_ptr.vmem [resolvable:$true] %s1722_s25 }
 0x5ba   :  { %1472 = vmax.xlane.f32.xlu0 %v1471_v56  ;;  %1927 = vmatpush3.bf16.msra.mxu0 %v1488_v40  ;;  %v1498_v49 = vld [vmem:[#allocation2 + $0xd0] sm:$0xff]  ;;  %v1410_v50 = vld [vmem:[#allocation2 + $0x18] sm:$0xff]  ;;  %v1419_v57 = vld [vmem:[#allocation2 + $0x60] sm:$0xff]  ;;  %s2161_s26 = scalar_lea.vmem %s1723_s25, 128  ;;  %p2166_p3 = scmp.lt.s32.totalorder %s1723_s25, %s1723_s25 }
 0x5bb   :  { %1928 = vmatprep.subr.bf16.mxu0 %v1497_v45  ;;  %v1490_v54 = vld [vmem:[#allocation2 + $0x90] sm:$0xff]  ;;  %v1499_v60 = vld [vmem:[#allocation2 + $0xd8] sm:$0xff]  ;;  %v1411_v61 = vld [vmem:[#allocation2 + $0x20] sm:$0xff]  ;;  %p2162_p2 = scmp.ne.s32.totalorder %s1723_s25, %s2161_s26  ;;  %p2167_p4 = scmp.lt.s32.totalorder %s2161_s26, %s2161_s26 }
 0x5bc   :  { %1636 = vmax.xlane.f32.xlu1 %v1635_v58  ;;  %1907 = vmatpush3.bf16.msra.mxu1 %v1408_v41  ;;  %v1491_v62 = vld [vmem:[#allocation2 + $0x98] sm:$0xff]  ;;  %v1420_v63 = vld [vmem:[#allocation2 + $0x68] sm:$0xff]  ;;  %v1500_v0 = vld [vmem:[#allocation2 + $0xe0] sm:$0xff] }
 0x5bd   :  { %1908 = vmatprep.subr.bf16.mxu1 %v1417_v44  ;;  %v1492_v1 = vld [vmem:[#allocation2 + $0xa0] sm:$0xff]  ;;  %v1412_v2 = vld [vmem:[#allocation2 + $0x28] sm:$0xff]  ;;  %v1421_v7 = vld [vmem:[#allocation2 + $0x70] sm:$0xff]  ;;  %p2168_p5 = por %p2167_p4, %p2166_p3 }
 0x5be   :  { %1929 = vmatpush3.bf16.msra.mxu0 %v1489_v47  ;;  %v1501_v39 = vld [vmem:[#allocation2 + $0xe8] sm:$0xff]  ;;  %v1413_v42 = vld [vmem:[#allocation2 + $0x30] sm:$0xff]  ;;  %v1422_v23 = vld [vmem:[#allocation2 + $0x78] sm:$0xff] }
 0x5bf   :  { %1930 = vmatprep.subr.bf16.mxu0 %v1498_v49  ;;  %v1493_v10 = vld [vmem:[#allocation2 + $0xa8] sm:$0xff]  ;;  %v1502_v43 = vld [vmem:[#allocation2 + $0xf0] sm:$0xff]  ;;  %v1414_v26 = vld [vmem:[#allocation2 + $0x38] sm:$0xff]  ;;  %p2169_p6 = pnand %p2168_p5, %p2162_p2 }
 0x5c0   :  { %1909 = vmatpush3.bf16.msra.mxu1 %v1409_v46  ;;  %v1494_v11 = vld [vmem:[#allocation2 + $0xb0] sm:$0xff]  ;;  %v1503_v12 = vld [vmem:[#allocation2 + $0xf8] sm:$0xff]  ;;  %v1578_v6 = vld [vmem:[#allocation2 + $0x140] sm:$0xff] }
 0x5c1   :  { %1910 = vmatprep.subr.bf16.mxu1 %v1418_v48  ;;  %v1495_v51 = vld [vmem:[#allocation2 + $0xb8] sm:$0xff]  ;;  %v1660_v15 = vld [vmem:[#allocation2 + $0x1c0] sm:$0xff] }
 0x5c2   :  { %1931 = vmatpush3.bf16.msra.mxu0 %v1490_v54  ;;  %v1570_v49 = vld [vmem:[#allocation2 + $0x100] sm:$0xff] }
 0x5c3   :  { %1932 = vmatprep.subr.bf16.mxu0 %v1499_v60  ;;  %v1579_v60 = vld [vmem:[#allocation2 + $0x148] sm:$0xff] }
 0x5c4   :  { %1911 = vmatpush3.bf16.msra.mxu1 %v1410_v50 }
 0x5c5   :  { %1912 = vmatprep.subr.bf16.mxu1 %v1419_v57 }
 0x5c6   :  { %1933 = vmatpush3.bf16.msra.mxu0 %v1491_v62 }
 0x5c7   :  { %1934 = vmatprep.subr.bf16.mxu0 %v1500_v0  ;;  %v1580_v0 = vld [vmem:[#allocation2 + $0x150] sm:$0xff] }
 0x5c8   :  { %1913 = vmatpush3.bf16.msra.mxu1 %v1411_v61 }
 0x5c9   :  { %1914 = vmatprep.subr.bf16.mxu1 %v1420_v63  ;;  %v1571_v63 = vld [vmem:[#allocation2 + $0x108] sm:$0xff] }
 0x5ca   :  { %1935 = vmatpush3.bf16.msra.mxu0 %v1492_v1  ;;  %v1661_v1 = vld [vmem:[#allocation2 + $0x1c8] sm:$0xff] }
 0x5cb   :  { %1936 = vmatprep.subr.bf16.mxu0 %v1501_v39  ;;  %v1572_v39 = vld [vmem:[#allocation2 + $0x110] sm:$0xff] }
 0x5cc   :  { %1915 = vmatpush3.bf16.msra.mxu1 %v1412_v2 }
 0x5cd   :  { %1916 = vmatprep.subr.bf16.mxu1 %v1421_v7  ;;  %v1653_v7 = vld [vmem:[#allocation2 + $0x188] sm:$0xff] }
 0x5ce   :  { %1937 = vmatpush3.bf16.msra.mxu0 %v1493_v10  ;;  %v1581_v10 = vld [vmem:[#allocation2 + $0x158] sm:$0xff] }
 0x5cf   :  { %1938 = vmatprep.subr.bf16.mxu0 %v1502_v43  ;;  %v1573_v43 = vld [vmem:[#allocation2 + $0x118] sm:$0xff] }
 0x5d0   :  { %1917 = vmatpush3.bf16.msra.mxu1 %v1413_v42  ;;  %v1662_v42 = vld [vmem:[#allocation2 + $0x1d0] sm:$0xff] }
 0x5d1   :  { %1918 = vmatprep.subr.bf16.mxu1 %v1422_v23  ;;  %v1654_v23 = vld [vmem:[#allocation2 + $0x190] sm:$0xff] }
 0x5d2   :  { %1939 = vmatpush3.bf16.msra.mxu0 %v1494_v11  ;;  %v1582_v11 = vld [vmem:[#allocation2 + $0x160] sm:$0xff] }
 0x5d3   :  { %1940 = vmatprep.subr.bf16.mxu0 %v1503_v12  ;;  %v1574_v12 = vld [vmem:[#allocation2 + $0x120] sm:$0xff] }
 0x5d4   :  { %1919 = vmatpush3.bf16.msra.mxu1 %v1414_v26  ;;  %v1663_v26 = vld [vmem:[#allocation2 + $0x1d8] sm:$0xff] }
 0x5d5   :  { %1948 = vmatprep.subr.bf16.mxu1 %v1578_v6  ;;  %v1655_v6 = vld [vmem:[#allocation2 + $0x198] sm:$0xff] }
 0x5d6   :  { %1941 = vmatpush3.bf16.msra.mxu0 %v1495_v51  ;;  %v1583_v51 = vld [vmem:[#allocation2 + $0x168] sm:$0xff] }
 0x5d7   :  { %1970 = vmatprep.subr.bf16.mxu0 %v1660_v15  ;;  %v1664_v15 = vld [vmem:[#allocation2 + $0x1e0] sm:$0xff] }
 0x643   :  { %v2442_v16 = vpop.xlane.xlu0 %1391 }
 0x644   :  { %v1393_v53 = vmax.f32 %v2442_v16, 1e-06 }
 0x645   :  { %v2445_v52 = vpop.xlane.xlu1 %1554 }
 0x646   :  { %v1556_v17 = vmax.f32 %v2445_v52, 1e-06  ;;  %2109 = vrcp.f32 %v1393_v53 }
 0x647   :  { %v2450_v18 = vpop.xlane.xlu0 %1472 }
 0x648   :  { %2111 = vrcp.f32 %v1556_v17  ;;  %v1474_v19 = vmax.f32 %v2450_v18, 1e-06  ;;  %v1628_v18 = vsel %vm1627_vm13, %v2413_v14, 0.0 }
 0x649   :  { %v2455_v21 = vpop.xlane.xlu1 %1636 }
 0x64a   :  { %v1638_v22 = vmax.f32 %v2455_v21, 1e-06  ;;  %2113 = vrcp.f32 %v1474_v19 }
 0x64c   :  { %2115 = vrcp.f32 %v1638_v22 }
 0x650   :  { %v2110_v24 = vpop.eup %2109 }
 0x651   :  { %v1395_v27 = vmul.f32 127.0, %v2110_v24 }
 0x652   :  { %v2112_v25 = vpop.eup %2111 }
 0x653   :  { %v2462_v28 = vmul.f32 127.0, %v2112_v25  ;;  %v1397_v55 = vmul.f32 %v1395_v27, %v2386_v31  ;;  %v1396_v59 = vmul.f32 %v1395_v27, %v2382_v29  ;;  %v1575_v25 = vld [vmem:[#allocation2 + $0x128] sm:$0xff]  ;;  %v1656_v27 = vld [vmem:[#allocation2 + $0x1a0] sm:$0xff] }
 0x654   :  { %v2114_v30 = vpop.eup %2113 }
 0x655   :  { %v1560_v33 = vmul.f32 %v2462_v28, %v2402_v8  ;;  %v2053_v58 = vround.rtne.f32 %v1397_v55  ;;  %v2052_v34 = vround.rtne.f32 %v1396_v59  ;;  %v1476_v35 = vmul.f32 127.0, %v2114_v30  ;;  %v1584_v55 = vld [vmem:[#allocation2 + $0x170] sm:$0xff]  ;;  %v1665_v59 = vld [vmem:[#allocation2 + $0x1e8] sm:$0xff] }
 0x656   :  { %v2116_v56 = vpop.eup %2115  ;;  %v1559_v24 = vmul.f32 %v2462_v28, %v2398_v4  ;;  %v1666_v4 = vld [vmem:[#allocation2 + $0x1f0] sm:$0xff] }
 0x657   :  { %v2468_v36 = vmul.f32 127.0, %v2116_v56  ;;  %v2057_v37 = vround.rtne.f32 %v1560_v33  ;;  %v1879_v40 = vclamps-f32 %v2053_v58, 127.0  ;;  %v1878_v41 = vclamps-f32 %v2052_v34, 127.0  ;;  %v1576_v56 = vld [vmem:[#allocation2 + $0x130] sm:$0xff]  ;;  %v1657_v58 = vld [vmem:[#allocation2 + $0x1a8] sm:$0xff]  ;;  %v1585_v34 = vld [vmem:[#allocation2 + $0x178] sm:$0xff] }
 0x658   :  { %v1478_v44 = vmul.f32 %v1476_v35, %v2388_v32  ;;  %v1477_v45 = vmul.f32 %v1476_v35, %v2384_v5  ;;  %v2056_v30 = vround.rtne.f32 %v1559_v24 }
 0x659   :  { %v1883_v31 = vclamps-f32 %v2057_v37, 127.0  ;;  %v1642_v29 = vmul.f32 %v2468_v36, %v2404_v9  ;;  %v1406_v46 = vpack.c.bf16 %v1879_v40, %v1879_v40  ;;  %v1405_v47 = vpack.c.bf16 %v1878_v41, %v1878_v41  ;;  %v1652_v9 = vld [vmem:[#allocation2 + $0x180] sm:$0xff]  ;;  %v1577_v37 = vld [vmem:[#allocation2 + $0x138] sm:$0xff]  ;;  %v1658_v40 = vld [vmem:[#allocation2 + $0x1b0] sm:$0xff] }
 0x65a   :  { %v2055_v8 = vround.rtne.f32 %v1478_v44  ;;  %v2054_v48 = vround.rtne.f32 %v1477_v45  ;;  %v1641_v33 = vmul.f32 %v2468_v36, %v2400_v38  ;;  %v1882_v35 = vclamps-f32 %v2056_v30, 127.0  ;;  %v1667_v41 = vld [vmem:[#allocation2 + $0x1f8] sm:$0xff] }
 0x65b   :  { %v1569_v50 = vpack.c.bf16 %v1883_v31, %v1883_v31  ;;  %v2059_v54 = vround.rtne.f32 %v1642_v29  ;;  %1455 = vmatprep.mubr.bf16.mxu1 %v1406_v46  ;;  %v1659_v38 = vld [vmem:[#allocation2 + $0x1b8] sm:$0xff]  ;;  %v1465_v31 = vsel %vm1464_vm9, %v2413_v14, 0.0  ;;  %v1404_v29 = vmul.f32 0.007874016, %v1393_v53 }
 0x65c   :  { %v1881_v57 = vclamps-f32 %v2055_v8, 127.0  ;;  %v1880_v61 = vclamps-f32 %v2054_v48, 127.0  ;;  %1456 = vmatmul.mubr.bf16.vlgmr.msra.gmra.mrb[16].mxu1 %v1405_v47  ;;  %v2058_v28 = vround.rtne.f32 %v1641_v33  ;;  %v1568_v45 = vpack.c.bf16 %v1882_v35, %v1882_v35 }
 0x65d   :  { %v1885_v62 = vclamps-f32 %v2059_v54, 127.0  ;;  %1949 = vmatpush3.bf16.msra.mxu1 %v1570_v49  ;;  %1618 = vmatprep.mubr.bf16.mxu1 %v1569_v50  ;;  %v1466_v46 = vsel %vm1463_vm10, %v2411_v13, %v1465_v31  ;;  %v1546_v47 = vsel %vm1545_vm11, %v2413_v14, 0.0  ;;  %v1485_v49 = vmul.f32 0.007874016, %v1474_v19 }
 0x65e   :  { %v1487_v32 = vpack.c.bf16 %v1881_v57, %v1881_v57  ;;  %v1486_v5 = vpack.c.bf16 %v1880_v61, %v1880_v61  ;;  %1950 = vmatprep.subr.bf16.mxu1 %v1579_v60  ;;  %v1884_v44 = vclamps-f32 %v2058_v28, 127.0  ;;  %v1467_v54 = vmul.f32 %v1466_v46, %v1404_v29 }
 0x65f   :  { %v1651_v2 = vpack.c.bf16 %v1885_v62, %v1885_v62  ;;  %v1547_v60 = vsel %vm1544_vm12, %v2411_v13, %v1546_v47  ;;  %v1567_v19 = vmul.f32 0.007874016, %v1556_v17 }
 0x660   :  { %1536 = vmatprep.mubr.bf16.mxu0 %v1487_v32  ;;  %v1650_v36 = vpack.c.bf16 %v1884_v44, %v1884_v44  ;;  %v1548_v32 = vmul.f32 %v1547_v60, %v1485_v49 }
 0x661   :  { %1537 = vmatmul.mubr.bf16.vlgmr.msra.gmra.mrb[20].mxu0 %v1486_v5  ;;  %1951 = vmatpush3.bf16.msra.mxu1 %v1571_v63 }
 0x662   :  { %1971 = vmatpush3.bf16.msra.mxu0 %v1652_v9  ;;  %1952 = vmatprep.subr.bf16.mxu1 %v1580_v0 }
 0x663   :  { %1972 = vmatprep.subr.bf16.mxu0 %v1661_v1  ;;  %1700 = vmatprep.mubr.bf16.mxu0 %v1651_v2  ;;  %v1629_v2 = vsel %vm1626_vm14, %v2411_v13, %v1628_v18 }
 0x665   :  { %1953 = vmatpush3.bf16.msra.mxu1 %v1572_v39  ;;  %v1710_v39 = vsel %vm1709_vm15, %v2413_v14, 0.0 }
 0x666   :  { %1973 = vmatpush3.bf16.msra.mxu0 %v1653_v7  ;;  %1954 = vmatprep.subr.bf16.mxu1 %v1581_v10 }
 0x667   :  { %1974 = vmatprep.subr.bf16.mxu0 %v1662_v42  ;;  %v1649_v42 = vmul.f32 0.007874016, %v1638_v22 }
 0x669   :  { %1955 = vmatpush3.bf16.msra.mxu1 %v1573_v43 }
 0x66a   :  { %1975 = vmatpush3.bf16.msra.mxu0 %v1654_v23  ;;  %1956 = vmatprep.subr.bf16.mxu1 %v1582_v11  ;;  %v1630_v23 = vmul.f32 %v1629_v2, %v1567_v19 }
 0x66b   :  { %1976 = vmatprep.subr.bf16.mxu0 %v1663_v26  ;;  %v1711_v26 = vsel %vm1708_vm0, %v2411_v13, %v1710_v39 }
 0x66d   :  { %1957 = vmatpush3.bf16.msra.mxu1 %v1574_v12 }
 0x66e   :  { %1977 = vmatpush3.bf16.msra.mxu0 %v1655_v6  ;;  %1958 = vmatprep.subr.bf16.mxu1 %v1583_v51  ;;  %v1712_v6 = vmul.f32 %v1711_v26, %v1649_v42 }
 0x66f   :  { %1978 = vmatprep.subr.bf16.mxu0 %v1664_v15 }
 0x671   :  { %1959 = vmatpush3.bf16.msra.mxu1 %v1575_v25 }
 0x672   :  { %1979 = vmatpush3.bf16.msra.mxu0 %v1656_v27  ;;  %1960 = vmatprep.subr.bf16.mxu1 %v1584_v55 }
 0x673   :  { %1980 = vmatprep.subr.bf16.mxu0 %v1665_v59 }
 0x675   :  { %1961 = vmatpush3.bf16.msra.mxu1 %v1576_v56 }
 0x676   :  { %1981 = vmatpush3.bf16.msra.mxu0 %v1657_v58  ;;  %1962 = vmatprep.subr.bf16.mxu1 %v1585_v34 }
 0x677   :  { %1982 = vmatprep.subr.bf16.mxu0 %v1666_v4 }
 0x679   :  { %1963 = vmatpush3.bf16.msra.mxu1 %v1577_v37 }
 0x67a   :  { %1983 = vmatpush3.bf16.msra.mxu0 %v1658_v40 }
 0x67b   :  { %1984 = vmatprep.subr.bf16.mxu0 %v1667_v41 }
 0x67c   :  { %1619 = vmatmul.mubr.bf16.vlgmr.msra.gmra.mrb[20].mxu1 %v1568_v45 }
 0x67e   :  { %1985 = vmatpush3.bf16.msra.mxu0 %v1659_v38 }
 0x681   :  { %1701 = vmatmul.mubr.bf16.vlgmr.msra.gmra.mrb[24].mxu0 %v1650_v36 }
 0x72f   :  { %v1920_v8 = vpop.f32.mrb[16].mxu1 }
 0x730   :  { %v1921_v48 = vpop.f32.mrb[17].mxu1 }
 0x731   :  { %v1922_v50 = vadd.f32 %v1921_v48, %v1920_v8  ;;  %v1923_v57 = vpop.f32.mrb[18].mxu1 }
 0x732   :  { %v1924_v61 = vpop.f32.mrb[19].mxu1 }
 0x733   :  { %v1468_v62 = vmul.f32 %v1922_v50, %v1467_v54 }
 0x734   :  { %v1942_v16 = vpop.f32.mrb[20].mxu0 }
 0x735   :  { %v1943_v53 = vpop.f32.mrb[21].mxu0 }
 0x736   :  { %v1944_v5 = vadd.f32 %v1943_v53, %v1942_v16  ;;  %v1945_v63 = vpop.f32.mrb[22].mxu0 }
 0x737   :  { %v1946_v9 = vpop.f32.mrb[23].mxu0 }
 0x738   :  { %v1549_v0 = vmul.f32 %v1944_v5, %v1548_v32 }
 0x73a   :  { %v1550_v1 = vadd.f32 %v1549_v0, %v1468_v62 }
 0x74f   :  { %v1964_v7 = vpop.f32.mrb[20].mxu1 }
 0x750   :  { %v1965_v10 = vpop.f32.mrb[21].mxu1 }
 0x751   :  { %v1966_v43 = vadd.f32 %v1965_v10, %v1964_v7  ;;  %v1967_v11 = vpop.f32.mrb[22].mxu1 }
 0x752   :  { %v1968_v20 = vpop.f32.mrb[23].mxu1 }
 0x753   :  { %v1631_v12 = vmul.f32 %v1966_v43, %v1630_v23 }
 0x754   :  { %v1986_v52 = vpop.f32.mrb[24].mxu0 }
 0x755   :  { %v1987_v17 = vpop.f32.mrb[25].mxu0  ;;  %v1632_v51 = vadd.f32 %v1631_v12, %v1550_v1 }
 0x756   :  { %v1988_v15 = vadd.f32 %v1987_v17, %v1986_v52  ;;  %v1989_v3 = vpop.f32.mrb[26].mxu0 }
 0x757   :  { %v1990_v24 = vpop.f32.mrb[27].mxu0 }
 0x758   :  { %v1713_v14 = vmul.f32 %v1988_v15, %v1712_v6 }
 0x75a   :  { %v1714_v25 = vadd.f32 %v1713_v14, %v1632_v51 }
 0x75c   :  { %1715 = vst [vmem:[#allocation7] sm:$0xff] %v1714_v25 }
 0x75d   :  { %2172 = shalt.err (!%p2169_p6)
}
 0x75e   :  { %s2173_s29 = scalar_lea.hbm %s2518_s4, 128 }
 0x75f   :  { %p2174_p7 = scmp.ne.s32.totalorder %s2518_s4, %s2173_s29  ;;  %p2177_p8 = scmp.lt.u32.totalorder %s2173_s29, %s2518_s4 }
 0x761   :  { %p2179_p9 = pnand %p2177_p8, %p2174_p7 }
 0x763   :  { %2182 = shalt.err (!%p2179_p9)
}
 0x764   :  { %1725 = dma.vmem_to_hbm [thread:$0]  %s1723_s25, 128, %s2518_s4, [#allocation6]  }
 0x765   :  { %2187 = dma.done.wait [#allocation6], 128  }
 0x766   :  { %2188 = vsyncadd [#allocation6], 4294967168 }
 0x767   :  { %1733 = vsyncpa [#allocation5], 1 }
 0x768   :  { %1734 = vsyncpa [#allocation6], 1 }
 0x769   :  { %1735 = vsyncmov [#allocation3] }
 0x76c   :  { %s1736_s11 = vpop.sfrf %1735 }
 0x76d   :  { %p1886_p10 = scmp.ne.s32.totalorder %s1736_s11, 0 }
 0x76f   :  { %1740 = shalt.err (%p1886_p10)  }

</bundles_post_ra>
